<compile_context>
chip_gen: v5e
topology: v5e:2x2
jax: 0.10.0
libtpu: 0.0.40
codegen_flags: <defaults>
</compile_context>

<pallas_src>
import math
import jax
import jax.numpy as jnp
from jax.experimental import pallas as pl
from jax.experimental.pallas import tpu as pltpu


OUT_LANES = 128  # padded lane width of the kernel output (final fc has 2 real outputs)


# ----------------------------------------------------------------------------
# Operand packing: group same-lane-width constants into a few sublane-stacked
# arrays so the kernel prologue issues ~8 DMAs instead of ~50.
# ----------------------------------------------------------------------------
class _PackSet:
    def __init__(self):
        self._groups = {}  # lane width -> list[(name, array)]

    def add(self, name, arr):
        arr = jnp.asarray(arr, jnp.float32)
        assert arr.ndim == 2, (name, arr.shape)
        self._groups.setdefault(int(arr.shape[1]), []).append((name, arr))

    def finalize(self):
        arrays, lookup = [], {}
        for idx, width in enumerate(sorted(self._groups)):
            parts, rows = [], 0
            for name, arr in self._groups[width]:
                n = arr.shape[0]
                lookup[name] = (idx, rows, n)
                pad = (-n) % 8            # keep every segment 8-row (sublane) aligned
                if pad:
                    arr = jnp.pad(arr, ((0, pad), (0, 0)))
                parts.append(arr)
                rows += n + pad
            arrays.append(jnp.concatenate(parts, axis=0))
        return arrays, lookup


# ----------------------------------------------------------------------------
# Fused forward kernel (embeddings + encoder + decoder in ONE pallas_call)
# ----------------------------------------------------------------------------
def _make_fused_kernel(dims, lookup, n_packs):
    B, S, D, H = dims["B"], dims["S"], dims["D"], dims["H"]
    BS = B * S

    def kernel(*refs):
        cols_x_ref, cols_y_ref = refs[0], refs[1]
        packs = refs[2:2 + n_packs]
        o_ref = refs[2 + n_packs]

        def V(name):
            idx, row, nrow = lookup[name]
            return packs[idx][row:row + nrow, :]

        def mm(a, b):
            return jnp.dot(a, b, preferred_element_type=jnp.float32)

        def ln(v, g, b):
            # annotated-transformer LayerNorm (unbiased std, eps added to std)
            # TODO(synk): if the reference tf.LayerNorm is torch.nn.LayerNorm this should
            #             use biased variance with eps inside the sqrt.
            mean = jnp.mean(v, axis=-1, keepdims=True)
            d = v - mean
            var = jnp.sum(d * d, axis=-1, keepdims=True) * (1.0 / (v.shape[-1] - 1))
            return V(g) * d / (jnp.sqrt(var) + 1e-6) + V(b)

        def elu(v):
            return jnp.where(v > 0, v, jnp.exp(jnp.minimum(v, 0.0)) - 1.0)

        # ---------------- embeddings (+ positional encoding) ----------------
        # temporal conv (block-diag over channels) -> spatial conv -> ELU -> avgpool -> +PE
        h1x = mm(cols_x_ref[...], V("wt_x"))                   # (B*T_e, Ch_e*F1_e)
        ax = elu(mm(h1x, V("ws_x")) + V("bs_x"))               # (B*T_e, D)
        x0 = mm(V("pool_x"), ax) + V("pe")                     # (B*S, D)

        h1y = mm(cols_y_ref[...], V("wt_y"))                   # (B*T_n, Ch_n*F1_n)
        ay = elu(mm(h1y, V("ws_y")) + V("bs_y"))               # (B*T_n, D)
        y0 = mm(V("pool_y"), ay) + V("pe")                     # (B*S, D)

        # ---------------- encoder (cross-modal) ----------------
        xn = ln(x0, "xn1g", "xn1b")
        yn = ln(y0, "yn1g", "yn1b")

        # x queries attend to y keys/values.  (The y-branch attention of the reference
        # is dead code: its result is overwritten by `y = self.y_norm2(x)`, so it is
        # intentionally not computed.)
        Q = mm(xn, V("wq")) + V("bq")        # 1/sqrt(d_h) already folded into wq/bq
        K = mm(yn, V("wk")) + V("bk")
        Vv = mm(yn, V("wv")) + V("bv")
        bbias = V("bbias")                   # (B*S, B*S): 0 within batch, -1e9 across
        O = jnp.zeros((BS, D), jnp.float32)
        for h in range(H):
            mh = V("hm%d" % h)               # (1, D) head-lane mask (constant)
            s = jax.lax.dot_general(Q * mh, K, (((1,), (1,)), ((), ())),
                                    preferred_element_type=jnp.float32) + bbias
            s = s - jnp.max(s, axis=-1, keepdims=True)
            p = jnp.exp(s)
            p = p / jnp.sum(p, axis=-1, keepdims=True)
            O = O + mm(p, Vv * mh)
        x1 = xn + mm(O, V("wo")) + V("bo")   # residual on the normalized x (as in reference)

        x2 = ln(x1, "xn2g", "xn2b")
        y2 = ln(x2, "yn2g", "yn2b")          # reference quirk: y_norm2 applied to (x_norm2'd) x

        # merged x/y FeedForward with block-diagonal weights
        xy2 = jnp.concatenate([x2, y2], axis=1)                     # (B*S, 2D)
        hid = jnp.maximum(mm(xy2, V("ffw1")) + V("ffb1"), 0.0)      # (B*S, 2*FF)
        xy3 = xy2 + mm(hid, V("ffw2")) + V("ffb2")                  # (B*S, 2D) = [x_enc|y_enc]

        # ---------------- decoder ----------------
        # Conv1d(kernel=seq_len) for BOTH modalities via one masked matmul chain
        z = mm(xy3, V("wbig")) * V("cmask")                         # (B*S, 2*S*D)
        gg = mm(z, V("fold"))                                       # (B*S, 2D)
        xcyc = mm(V("rsum"), gg) + V("bconv")                       # (B, 2D) = [xc|yc]

        # LMF fusion; rank-sum + final fc folded into one constant matmul
        zz = mm(xcyc, V("fwlmf")) + V("f0lmf")                      # (B, 2*R*D)
        RD = zz.shape[-1] // 2
        prod = zz[:, :RD] * zz[:, RD:]                              # (B, R*D)
        o_ref[...] = mm(prod, V("wfin")) + V("bfin")                # (B, 128) padded logits

    return kernel


# ----------------------------------------------------------------------------
# Plain-JAX layout glue (constant-folded under jit for the weight-derived parts)
# ----------------------------------------------------------------------------
def _im2col(inp, K):
    """(B, Cin, Ch, T) NCHW, 'same' temporal padding -> (B*T, Ch*Cin*K), rows (b,t)."""
    Bq, Cin, Ch, T = inp.shape
    pad = K // 2
    xp = jnp.pad(inp, ((0, 0), (0, 0), (0, 0), (pad, pad)))
    cols = jnp.stack([xp[..., k:k + T] for k in range(K)], axis=-1)   # (B,Cin,Ch,T,K)
    cols = jnp.transpose(cols, (0, 3, 2, 1, 4))                        # (B,T,Ch,Cin,K)
    return cols.reshape(Bq * T, Ch * Cin * K)


def _positional_encoding(S, D):
    pos = jnp.arange(S, dtype=jnp.float32)[:, None]
    i = jnp.arange(0, D, 2, dtype=jnp.float32)
    div = jnp.exp(-jnp.log(10000.0) * i / D)
    pe = jnp.zeros((S, D), jnp.float32)
    pe = pe.at[:, 0::2].set(jnp.sin(pos * div))
    pe = pe.at[:, 1::2].set(jnp.cos(pos * div))
    return pe


def _blockdiag(a, b):
    f32 = jnp.float32
    za = jnp.zeros((a.shape[0], b.shape[1]), f32)
    zb = jnp.zeros((b.shape[0], a.shape[1]), f32)
    return jnp.concatenate([jnp.concatenate([a, za], axis=1),
                            jnp.concatenate([zb, b], axis=1)], axis=0)


def multimodal_transformer(x, y, params, args_att, args_eeg, args_nirs):
    f32 = jnp.float32
    B = x.shape[0]
    S, D, H = args_att["seq_len"], args_att["emb_dim"], args_att["head"]
    DH = D // H
    T_e, T_n = x.shape[-1], y.shape[-1]
    CH_E, F1_E, K_E = args_eeg["channel"], args_eeg["F1"], args_eeg["kern_length"]
    CH_N, F1_N, K_N = args_nirs["channel"], args_nirs["F1"], args_nirs["kern_length"]
    emb_e, emb_n, enc, dec = params["emb_eeg"], params["emb_nirs"], params["enc"], params["dec"]
    R = dec["lmf_fx"].shape[0]
    row = lambda v: jnp.asarray(v, f32).reshape(1, -1)

    # ---------------- data (im2col, runtime) ----------------
    cols_x = _im2col(x, K_E)                                 # (B*T_e, CH_E*Cin*K_E)
    cols_y = _im2col(y, K_N)                                 # (B*T_n, CH_N*Cin*K_N)

    # ---------------- constants (weight-derived; folded at compile time) ----------------
    ps = _PackSet()
    eyeB = jnp.eye(B, dtype=f32)

    # embeddings: block-diag temporal conv weight, temporal bias folded into spatial bias
    def emb_consts(p, Ch):
        wt_bd = jnp.kron(jnp.eye(Ch, dtype=f32), p["Wt"])            # (Ch*Cin*K, Ch*F1)
        bt_t = jnp.tile(p["bt"].reshape(1, -1), (1, Ch))             # (1, Ch*F1)
        bs2 = bt_t @ p["Ws"] + p["bs"].reshape(1, -1)                # (1, D)
        return wt_bd, p["Ws"], bs2

    wt_x, ws_x, bs_x = emb_consts(emb_e, CH_E)
    wt_y, ws_y, bs_y = emb_consts(emb_n, CH_N)
    pool_x = jnp.kron(eyeB, jnp.repeat(jnp.eye(S, dtype=f32), T_e // S, axis=1) / (T_e // S))
    pool_y = jnp.kron(eyeB, jnp.repeat(jnp.eye(S, dtype=f32), T_n // S, axis=1) / (T_n // S))
    pe = jnp.tile(_positional_encoding(S, D), (B, 1))

    ps.add("wt_x", wt_x); ps.add("ws_x", ws_x); ps.add("bs_x", bs_x); ps.add("pool_x", pool_x)
    ps.add("wt_y", wt_y); ps.add("ws_y", ws_y); ps.add("bs_y", bs_y); ps.add("pool_y", pool_y)
    ps.add("pe", pe)

    # LayerNorm params
    for name, key in (("xn1g", "x_n1_g"), ("xn1b", "x_n1_b"), ("yn1g", "y_n1_g"),
                      ("yn1b", "y_n1_b"), ("xn2g", "x_n2_g"), ("xn2b", "x_n2_b"),
                      ("yn2g", "y_n2_g"), ("yn2b", "y_n2_b")):
        ps.add(name, row(enc[key]))

    # attention (x-branch only; y-branch result is dead in the reference forward)
    xa = enc["x_attn"]
    scale = 1.0 / math.sqrt(DH)
    ps.add("wq", xa["Wq"] * scale); ps.add("bq", row(xa["bq"]) * scale)
    ps.add("wk", xa["Wk"]); ps.add("bk", row(xa["bk"]))
    ps.add("wv", xa["Wv"]); ps.add("bv", row(xa["bv"]))
    ps.add("wo", xa["Wo"]); ps.add("bo", row(xa["bo"]))
    same_batch = jnp.kron(eyeB, jnp.ones((S, S), f32))
    ps.add("bbias", jnp.where(same_batch > 0, 0.0, -1e9).astype(f32))      # (B*S, B*S)
    lane = jnp.arange(D)
    for h in range(H):
        ps.add("hm%d" % h, ((lane // DH) == h).astype(f32).reshape(1, D))  # head lane masks

    # merged feed-forwards (block-diagonal)
    ps.add("ffw1", _blockdiag(enc["x_ff_W1"], enc["y_ff_W1"]))
    ps.add("ffb1", row(jnp.concatenate([enc["x_ff_b1"], enc["y_ff_b1"]])))
    ps.add("ffw2", _blockdiag(enc["x_ff_W2"], enc["y_ff_W2"]))
    ps.add("ffb2", row(jnp.concatenate([enc["x_ff_b2"], enc["y_ff_b2"]])))

    # decoder Conv1d(kernel=S) via mask/fold trick, both modalities merged
    def big_conv(Wflat):   # (S*D, D) flattened (s, d) -> (D, S*D) with [d, s*D+o] = W[s, d, o]
        return jnp.transpose(Wflat.reshape(S, D, D), (1, 0, 2)).reshape(D, S * D)

    cmask1 = jnp.tile(jnp.repeat(jnp.eye(S, dtype=f32), D, axis=1), (B, 1))   # (B*S, S*D)
    fold1 = jnp.tile(jnp.eye(D, dtype=f32), (S, 1))                            # (S*D, D)
    ps.add("wbig", _blockdiag(big_conv(dec["conv_x_w"]), big_conv(dec["conv_y_w"])))
    ps.add("cmask", jnp.tile(cmask1, (1, 2)))
    ps.add("fold", _blockdiag(fold1, fold1))
    ps.add("rsum", jnp.kron(eyeB, jnp.ones((1, S), f32)))                      # (B, B*S)
    ps.add("bconv", row(jnp.concatenate([dec["conv_x_b"], dec["conv_y_b"]])))

    # LMF factors (lane-dense) + rank-sum & final fc folded into one constant matmul
    RD = R * D
    fxW = jnp.transpose(dec["lmf_fx"][:, 1:, :], (1, 0, 2)).reshape(D, RD)
    fyW = jnp.transpose(dec["lmf_fy"][:, 1:, :], (1, 0, 2)).reshape(D, RD)
    ps.add("fwlmf", _blockdiag(fxW, fyW))                                      # (2D, 2RD)
    ps.add("f0lmf", jnp.concatenate([dec["lmf_fx"][:, 0, :].reshape(1, RD),
                                     dec["lmf_fy"][:, 0, :].reshape(1, RD)], axis=1))
    n_out = dec["fc_w"].shape[1]
    wfin = (dec["lmf_w"].reshape(R, 1, 1) * dec["fc_w"].reshape(1, D, n_out)).reshape(RD, n_out)
    bfin = dec["lmf_b"].reshape(1, D) @ dec["fc_w"] + dec["fc_b"].reshape(1, n_out)
    ps.add("wfin", jnp.pad(wfin, ((0, 0), (0, OUT_LANES - n_out))))
    ps.add("bfin", jnp.pad(bfin, ((0, 0), (0, OUT_LANES - n_out))))

    pack_arrays, lookup = ps.finalize()
    operands = (cols_x, cols_y) + tuple(pack_arrays)

    dims = dict(B=B, S=S, D=D, H=H)
    kernel = _make_fused_kernel(dims, lookup, len(pack_arrays))

    in_specs = [pl.BlockSpec(a.shape, lambda i: (0, 0)) for a in operands]
    out = pl.pallas_call(
        kernel,
        out_shape=jax.ShapeDtypeStruct((B, OUT_LANES), jnp.float32),
        grid=(1,),
        in_specs=in_specs,
        out_specs=pl.BlockSpec((B, OUT_LANES), lambda i: (0, 0)),
        compiler_params=pltpu.CompilerParams(dimension_semantics=("arbitrary",)),
    )(*operands)
    return out[:, :n_out]


# ----------------------------------------------------------------------------
# Deterministic parameter init
# ----------------------------------------------------------------------------
def _init_linear(key, fan_in, fan_out):
    k1, k2 = jax.random.split(key)
    w = jax.random.normal(k1, (fan_in, fan_out), jnp.float32) / jnp.sqrt(float(fan_in))
    b = jax.random.normal(k2, (fan_out,), jnp.float32) * 0.01
    return w, b


def _init_mha(key, D):
    ks = jax.random.split(key, 4)
    Wq, bq = _init_linear(ks[0], D, D)
    Wk, bk = _init_linear(ks[1], D, D)
    Wv, bv = _init_linear(ks[2], D, D)
    Wo, bo = _init_linear(ks[3], D, D)
    return dict(Wq=Wq, bq=bq, Wk=Wk, bk=bk, Wv=Wv, bv=bv, Wo=Wo, bo=bo)


def init_params(key, args_att, args_eeg, args_nirs):
    D = args_att["emb_dim"]
    S = args_att["seq_len"]
    FF = args_att["ff_dim"]
    rank = 4
    keys = jax.random.split(key, 24)
    ki = iter(keys)

    def emb_params(args):
        Wt, bt = _init_linear(next(ki), args["in_channel"] * args["kern_length"], args["F1"])
        # spatial weight rows ordered (channel, F1)
        Ws, bs = _init_linear(next(ki), args["channel"] * args["F1"], args["emb_dim"])
        return dict(Wt=Wt, bt=bt, Ws=Ws, bs=bs, kern_length=args["kern_length"])

    enc = dict(
        x_n1_g=jnp.ones((D,), jnp.float32), x_n1_b=jnp.zeros((D,), jnp.float32),
        y_n1_g=jnp.ones((D,), jnp.float32), y_n1_b=jnp.zeros((D,), jnp.float32),
        x_n2_g=jnp.ones((D,), jnp.float32), x_n2_b=jnp.zeros((D,), jnp.float32),
        y_n2_g=jnp.ones((D,), jnp.float32), y_n2_b=jnp.zeros((D,), jnp.float32),
        x_attn=_init_mha(next(ki), D), y_attn=_init_mha(next(ki), D),
    )
    enc["x_ff_W1"], enc["x_ff_b1"] = _init_linear(next(ki), D, FF)
    enc["x_ff_W2"], enc["x_ff_b2"] = _init_linear(next(ki), FF, D)
    enc["y_ff_W1"], enc["y_ff_b1"] = _init_linear(next(ki), D, FF)
    enc["y_ff_W2"], enc["y_ff_b2"] = _init_linear(next(ki), FF, D)

    # Conv1d(D, D, kernel=S) flattened as (S*D, D) in (seq, feature) row order
    conv_x_w, conv_x_b = _init_linear(next(ki), S * D, D)
    conv_y_w, conv_y_b = _init_linear(next(ki), S * D, D)
    lmf_fx = jax.random.normal(next(ki), (rank, D + 1, D), jnp.float32) / jnp.sqrt(float(D + 1))
    lmf_fy = jax.random.normal(next(ki), (rank, D + 1, D), jnp.float32) / jnp.sqrt(float(D + 1))
    lmf_w = jax.random.normal(next(ki), (1, rank), jnp.float32)
    lmf_b = jax.random.normal(next(ki), (1, D), jnp.float32) * 0.01
    fc_w, fc_b = _init_linear(next(ki), D, 2)

    dec = dict(conv_x_w=conv_x_w, conv_x_b=conv_x_b,
               conv_y_w=conv_y_w, conv_y_b=conv_y_b,
               lmf_fx=lmf_fx, lmf_fy=lmf_fy, lmf_w=lmf_w, lmf_b=lmf_b,
               fc_w=fc_w, fc_b=fc_b)

    return dict(emb_eeg=emb_params(args_eeg), emb_nirs=emb_params(args_nirs),
                enc=enc, dec=dec)


# ----------------------------------------------------------------------------
if __name__ == "__main__":
    args_att = dict(emb_dim=32, head=4, ff_dim=64, size=32, drop=0.0, seq_len=8)
    args_eeg = dict(in_channel=1, channel=8, F1=8, emb_dim=32, kern_length=5,
                    drop=0.0, data_type="eeg")
    args_nirs = dict(in_channel=1, channel=4, F1=4, emb_dim=32, kern_length=3,
                     drop=0.0, data_type="nirs")

    key = jax.random.PRNGKey(0)
    kx, ky, kp = jax.random.split(key, 3)
    B, T_eeg, T_nirs = 2, 32, 16
    x = jax.random.normal(kx, (B, args_eeg["in_channel"], args_eeg["channel"], T_eeg),
                          jnp.float32)
    y = jax.random.normal(ky, (B, args_nirs["in_channel"], args_nirs["channel"], T_nirs),
                          jnp.float32)
    params = init_params(kp, args_att, args_eeg, args_nirs)

    fwd = jax.jit(lambda xx, yy: multimodal_transformer(
        xx, yy, params, args_att, args_eeg, args_nirs))
    out = jax.block_until_ready(fwd(x, y))

    assert out.shape == (B, 2), out.shape
    assert bool(jnp.all(jnp.isfinite(out)))
    print("KERNEL_OK")
</pallas_src>

<mosaic_0001>
module attributes {stable_mosaic.version = 11 : i64} {
  func.func @kernel(%arg0: i32, %arg1: memref<64x40xf32, #tpu.memory_space<vmem>>, %arg2: memref<32x12xf32, #tpu.memory_space<vmem>>, %arg3: memref<40x16xf32, #tpu.memory_space<vmem>>, %arg4: memref<384x32xf32, #tpu.memory_space<vmem>>, %arg5: memref<712x64xf32, #tpu.memory_space<vmem>>, %arg6: memref<208x128xf32, #tpu.memory_space<vmem>>, %arg7: memref<72x256xf32, #tpu.memory_space<vmem>>, %arg8: memref<80x512xf32, #tpu.memory_space<vmem>>, %arg9: memref<2x128xf32, #tpu.memory_space<vmem>>) attributes {dimension_semantics = [#tpu.dimension_semantics<arbitrary>], iteration_bounds = array<i64: 1>, scalar_prefetch = 0 : i64, scratch_operands = 0 : i64, tpu.core_type = #tpu.core_type<tc>, window_params = [{pipeline_mode = #tpu.pipeline_mode<synchronous>, transform_indices = @transform_0, window_bounds = array<i64: 64, 40>}, {pipeline_mode = #tpu.pipeline_mode<synchronous>, transform_indices = @transform_1, window_bounds = array<i64: 32, 12>}, {pipeline_mode = #tpu.pipeline_mode<synchronous>, transform_indices = @transform_2, window_bounds = array<i64: 40, 16>}, {pipeline_mode = #tpu.pipeline_mode<synchronous>, transform_indices = @transform_3, window_bounds = array<i64: 384, 32>}, {pipeline_mode = #tpu.pipeline_mode<synchronous>, transform_indices = @transform_4, window_bounds = array<i64: 712, 64>}, {pipeline_mode = #tpu.pipeline_mode<synchronous>, transform_indices = @transform_5, window_bounds = array<i64: 208, 128>}, {pipeline_mode = #tpu.pipeline_mode<synchronous>, transform_indices = @transform_6, window_bounds = array<i64: 72, 256>}, {pipeline_mode = #tpu.pipeline_mode<synchronous>, transform_indices = @transform_7, window_bounds = array<i64: 80, 512>}, {pipeline_mode = #tpu.pipeline_mode<synchronous>, transform_indices = @transform_8, window_bounds = array<i64: 2, 128>}]} {
    %c0 = arith.constant 0 : index
    %c0_0 = arith.constant 0 : index
    %0 = vector.load %arg1[%c0, %c0_0] : memref<64x40xf32, #tpu.memory_space<vmem>>, vector<64x40xf32>
    %c0_1 = arith.constant 0 : index
    %c0_2 = arith.constant 0 : index
    %1 = vector.load %arg5[%c0_1, %c0_2] : memref<712x64xf32, #tpu.memory_space<vmem>>, vector<40x64xf32>
    %cst = arith.constant dense<0.000000e+00> : vector<64x64xf32>
    %2 = tpu.matmul %0, %1, %cst {dimension_numbers = #tpu.dot_dimension_numbers<[1], [0], [0], [1], [0, 0, 1, 1], [], []>} : vector<64x40xf32>, vector<40x64xf32>, vector<64x64xf32> -> vector<64x64xf32>
    %c0_3 = arith.constant 0 : index
    %c0_4 = arith.constant 0 : index
    %3 = vector.load %arg4[%c0_3, %c0_4] : memref<384x32xf32, #tpu.memory_space<vmem>>, vector<64x32xf32>
    %cst_5 = arith.constant dense<0.000000e+00> : vector<64x32xf32>
    %4 = tpu.matmul %2, %3, %cst_5 {dimension_numbers = #tpu.dot_dimension_numbers<[1], [0], [0], [1], [0, 0, 1, 1], [], []>} : vector<64x64xf32>, vector<64x32xf32>, vector<64x32xf32> -> vector<64x32xf32>
    %c64 = arith.constant 64 : index
    %c0_6 = arith.constant 0 : index
    %5 = vector.load %arg4[%c64, %c0_6] : memref<384x32xf32, #tpu.memory_space<vmem>>, vector<1x32xf32>
    %6 = vector.broadcast %5 : vector<1x32xf32> to vector<64x32xf32>
    %7 = arith.addf %4, %6 : vector<64x32xf32>
    %cst_7 = arith.constant 0.000000e+00 : f32
    %8 = vector.broadcast %cst_7 : f32 to vector<64x32xf32>
    %9 = arith.cmpf ogt, %7, %8 : vector<64x32xf32>
    %cst_8 = arith.constant 0.000000e+00 : f32
    %10 = vector.broadcast %cst_8 : f32 to vector<64x32xf32>
    %11 = arith.minimumf %7, %10 : vector<64x32xf32>
    %12 = math.exp %11 : vector<64x32xf32>
    %cst_9 = arith.constant 1.000000e+00 : f32
    %13 = vector.broadcast %cst_9 : f32 to vector<64x32xf32>
    %14 = arith.subf %12, %13 : vector<64x32xf32>
    %15 = arith.select %9, %7, %14 : vector<64x32xi1>, vector<64x32xf32>
    %c40 = arith.constant 40 : index
    %c0_10 = arith.constant 0 : index
    %16 = vector.load %arg5[%c40, %c0_10] : memref<712x64xf32, #tpu.memory_space<vmem>>, vector<16x64xf32>
    %cst_11 = arith.constant dense<0.000000e+00> : vector<16x32xf32>
    %17 = tpu.matmul %16, %15, %cst_11 {dimension_numbers = #tpu.dot_dimension_numbers<[1], [0], [0], [1], [0, 0, 1, 1], [], []>} : vector<16x64xf32>, vector<64x32xf32>, vector<16x32xf32> -> vector<16x32xf32>
    %c112 = arith.constant 112 : index
    %c0_12 = arith.constant 0 : index
    %18 = vector.load %arg4[%c112, %c0_12] : memref<384x32xf32, #tpu.memory_space<vmem>>, vector<16x32xf32>
    %19 = arith.addf %17, %18 : vector<16x32xf32>
    %c0_13 = arith.constant 0 : index
    %c0_14 = arith.constant 0 : index
    %20 = vector.load %arg2[%c0_13, %c0_14] : memref<32x12xf32, #tpu.memory_space<vmem>>, vector<32x12xf32>
    %c0_15 = arith.constant 0 : index
    %c0_16 = arith.constant 0 : index
    %21 = vector.load %arg3[%c0_15, %c0_16] : memref<40x16xf32, #tpu.memory_space<vmem>>, vector<12x16xf32>
    %cst_17 = arith.constant dense<0.000000e+00> : vector<32x16xf32>
    %22 = tpu.matmul %20, %21, %cst_17 {dimension_numbers = #tpu.dot_dimension_numbers<[1], [0], [0], [1], [0, 0, 1, 1], [], []>} : vector<32x12xf32>, vector<12x16xf32>, vector<32x16xf32> -> vector<32x16xf32>
    %c72 = arith.constant 72 : index
    %c0_18 = arith.constant 0 : index
    %23 = vector.load %arg4[%c72, %c0_18] : memref<384x32xf32, #tpu.memory_space<vmem>>, vector<16x32xf32>
    %cst_19 = arith.constant dense<0.000000e+00> : vector<32x32xf32>
    %24 = tpu.matmul %22, %23, %cst_19 {dimension_numbers = #tpu.dot_dimension_numbers<[1], [0], [0], [1], [0, 0, 1, 1], [], []>} : vector<32x16xf32>, vector<16x32xf32>, vector<32x32xf32> -> vector<32x32xf32>
    %c88 = arith.constant 88 : index
    %c0_20 = arith.constant 0 : index
    %25 = vector.load %arg4[%c88, %c0_20] : memref<384x32xf32, #tpu.memory_space<vmem>>, vector<1x32xf32>
    %26 = vector.broadcast %25 : vector<1x32xf32> to vector<32x32xf32>
    %27 = arith.addf %24, %26 : vector<32x32xf32>
    %cst_21 = arith.constant 0.000000e+00 : f32
    %28 = vector.broadcast %cst_21 : f32 to vector<32x32xf32>
    %29 = arith.cmpf ogt, %27, %28 : vector<32x32xf32>
    %cst_22 = arith.constant 0.000000e+00 : f32
    %30 = vector.broadcast %cst_22 : f32 to vector<32x32xf32>
    %31 = arith.minimumf %27, %30 : vector<32x32xf32>
    %32 = math.exp %31 : vector<32x32xf32>
    %cst_23 = arith.constant 1.000000e+00 : f32
    %33 = vector.broadcast %cst_23 : f32 to vector<32x32xf32>
    %34 = arith.subf %32, %33 : vector<32x32xf32>
    %35 = arith.select %29, %27, %34 : vector<32x32xi1>, vector<32x32xf32>
    %c96 = arith.constant 96 : index
    %c0_24 = arith.constant 0 : index
    %36 = vector.load %arg4[%c96, %c0_24] : memref<384x32xf32, #tpu.memory_space<vmem>>, vector<16x32xf32>
    %cst_25 = arith.constant dense<0.000000e+00> : vector<16x32xf32>
    %37 = tpu.matmul %36, %35, %cst_25 {dimension_numbers = #tpu.dot_dimension_numbers<[1], [0], [0], [1], [0, 0, 1, 1], [], []>} : vector<16x32xf32>, vector<32x32xf32>, vector<16x32xf32> -> vector<16x32xf32>
    %c112_26 = arith.constant 112 : index
    %c0_27 = arith.constant 0 : index
    %38 = vector.load %arg4[%c112_26, %c0_27] : memref<384x32xf32, #tpu.memory_space<vmem>>, vector<16x32xf32>
    %39 = arith.addf %37, %38 : vector<16x32xf32>
    %cst_28 = arith.constant dense<0.000000e+00> : vector<16xf32>
    %40 = vector.multi_reduction <add>, %19, %cst_28 [1] : vector<16x32xf32> to vector<16xf32>
    %41 = vector.shape_cast %40 : vector<16xf32> to vector<16x1xf32>
    %cst_29 = arith.constant 3.200000e+01 : f32
    %42 = vector.broadcast %cst_29 : f32 to vector<16x1xf32>
    %43 = arith.divf %41, %42 : vector<16x1xf32>
    %44 = vector.broadcast %43 : vector<16x1xf32> to vector<16x32xf32>
    %45 = arith.subf %19, %44 : vector<16x32xf32>
    %46 = arith.mulf %45, %45 : vector<16x32xf32>
    %cst_30 = arith.constant dense<0.000000e+00> : vector<16xf32>
    %47 = vector.multi_reduction <add>, %46, %cst_30 [1] : vector<16x32xf32> to vector<16xf32>
    %48 = vector.shape_cast %47 : vector<16xf32> to vector<16x1xf32>
    %cst_31 = arith.constant 0.0322580636 : f32
    %49 = vector.broadcast %cst_31 : f32 to vector<16x1xf32>
    %50 = arith.mulf %48, %49 : vector<16x1xf32>
    %c128 = arith.constant 128 : index
    %c0_32 = arith.constant 0 : index
    %51 = vector.load %arg4[%c128, %c0_32] : memref<384x32xf32, #tpu.memory_space<vmem>>, vector<1x32xf32>
    %52 = vector.broadcast %51 : vector<1x32xf32> to vector<16x32xf32>
    %53 = arith.mulf %52, %45 : vector<16x32xf32>
    %54 = math.sqrt %50 : vector<16x1xf32>
    %cst_33 = arith.constant 9.99999997E-7 : f32
    %55 = vector.broadcast %cst_33 : f32 to vector<16x1xf32>
    %56 = arith.addf %54, %55 : vector<16x1xf32>
    %57 = vector.broadcast %56 : vector<16x1xf32> to vector<16x32xf32>
    %58 = arith.divf %53, %57 : vector<16x32xf32>
    %c136 = arith.constant 136 : index
    %c0_34 = arith.constant 0 : index
    %59 = vector.load %arg4[%c136, %c0_34] : memref<384x32xf32, #tpu.memory_space<vmem>>, vector<1x32xf32>
    %60 = vector.broadcast %59 : vector<1x32xf32> to vector<16x32xf32>
    %61 = arith.addf %58, %60 : vector<16x32xf32>
    %cst_35 = arith.constant dense<0.000000e+00> : vector<16xf32>
    %62 = vector.multi_reduction <add>, %39, %cst_35 [1] : vector<16x32xf32> to vector<16xf32>
    %63 = vector.shape_cast %62 : vector<16xf32> to vector<16x1xf32>
    %cst_36 = arith.constant 3.200000e+01 : f32
    %64 = vector.broadcast %cst_36 : f32 to vector<16x1xf32>
    %65 = arith.divf %63, %64 : vector<16x1xf32>
    %66 = vector.broadcast %65 : vector<16x1xf32> to vector<16x32xf32>
    %67 = arith.subf %39, %66 : vector<16x32xf32>
    %68 = arith.mulf %67, %67 : vector<16x32xf32>
    %cst_37 = arith.constant dense<0.000000e+00> : vector<16xf32>
    %69 = vector.multi_reduction <add>, %68, %cst_37 [1] : vector<16x32xf32> to vector<16xf32>
    %70 = vector.shape_cast %69 : vector<16xf32> to vector<16x1xf32>
    %cst_38 = arith.constant 0.0322580636 : f32
    %71 = vector.broadcast %cst_38 : f32 to vector<16x1xf32>
    %72 = arith.mulf %70, %71 : vector<16x1xf32>
    %c144 = arith.constant 144 : index
    %c0_39 = arith.constant 0 : index
    %73 = vector.load %arg4[%c144, %c0_39] : memref<384x32xf32, #tpu.memory_space<vmem>>, vector<1x32xf32>
    %74 = vector.broadcast %73 : vector<1x32xf32> to vector<16x32xf32>
    %75 = arith.mulf %74, %67 : vector<16x32xf32>
    %76 = math.sqrt %72 : vector<16x1xf32>
    %cst_40 = arith.constant 9.99999997E-7 : f32
    %77 = vector.broadcast %cst_40 : f32 to vector<16x1xf32>
    %78 = arith.addf %76, %77 : vector<16x1xf32>
    %79 = vector.broadcast %78 : vector<16x1xf32> to vector<16x32xf32>
    %80 = arith.divf %75, %79 : vector<16x32xf32>
    %c152 = arith.constant 152 : index
    %c0_41 = arith.constant 0 : index
    %81 = vector.load %arg4[%c152, %c0_41] : memref<384x32xf32, #tpu.memory_space<vmem>>, vector<1x32xf32>
    %82 = vector.broadcast %81 : vector<1x32xf32> to vector<16x32xf32>
    %83 = arith.addf %80, %82 : vector<16x32xf32>
    %c192 = arith.constant 192 : index
    %c0_42 = arith.constant 0 : index
    %84 = vector.load %arg4[%c192, %c0_42] : memref<384x32xf32, #tpu.memory_space<vmem>>, vector<32x32xf32>
    %cst_43 = arith.constant dense<0.000000e+00> : vector<16x32xf32>
    %85 = tpu.matmul %61, %84, %cst_43 {dimension_numbers = #tpu.dot_dimension_numbers<[1], [0], [0], [1], [0, 0, 1, 1], [], []>} : vector<16x32xf32>, vector<32x32xf32>, vector<16x32xf32> -> vector<16x32xf32>
    %c224 = arith.constant 224 : index
    %c0_44 = arith.constant 0 : index
    %86 = vector.load %arg4[%c224, %c0_44] : memref<384x32xf32, #tpu.memory_space<vmem>>, vector<1x32xf32>
    %87 = vector.broadcast %86 : vector<1x32xf32> to vector<16x32xf32>
    %88 = arith.addf %85, %87 : vector<16x32xf32>
    %c232 = arith.constant 232 : index
    %c0_45 = arith.constant 0 : index
    %89 = vector.load %arg4[%c232, %c0_45] : memref<384x32xf32, #tpu.memory_space<vmem>>, vector<32x32xf32>
    %cst_46 = arith.constant dense<0.000000e+00> : vector<16x32xf32>
    %90 = tpu.matmul %83, %89, %cst_46 {dimension_numbers = #tpu.dot_dimension_numbers<[1], [0], [0], [1], [0, 0, 1, 1], [], []>} : vector<16x32xf32>, vector<32x32xf32>, vector<16x32xf32> -> vector<16x32xf32>
    %c264 = arith.constant 264 : index
    %c0_47 = arith.constant 0 : index
    %91 = vector.load %arg4[%c264, %c0_47] : memref<384x32xf32, #tpu.memory_space<vmem>>, vector<1x32xf32>
    %92 = vector.broadcast %91 : vector<1x32xf32> to vector<16x32xf32>
    %93 = arith.addf %90, %92 : vector<16x32xf32>
    %c272 = arith.constant 272 : index
    %c0_48 = arith.constant 0 : index
    %94 = vector.load %arg4[%c272, %c0_48] : memref<384x32xf32, #tpu.memory_space<vmem>>, vector<32x32xf32>
    %cst_49 = arith.constant dense<0.000000e+00> : vector<16x32xf32>
    %95 = tpu.matmul %83, %94, %cst_49 {dimension_numbers = #tpu.dot_dimension_numbers<[1], [0], [0], [1], [0, 0, 1, 1], [], []>} : vector<16x32xf32>, vector<32x32xf32>, vector<16x32xf32> -> vector<16x32xf32>
    %c304 = arith.constant 304 : index
    %c0_50 = arith.constant 0 : index
    %96 = vector.load %arg4[%c304, %c0_50] : memref<384x32xf32, #tpu.memory_space<vmem>>, vector<1x32xf32>
    %97 = vector.broadcast %96 : vector<1x32xf32> to vector<16x32xf32>
    %98 = arith.addf %95, %97 : vector<16x32xf32>
    %c16 = arith.constant 16 : index
    %c0_51 = arith.constant 0 : index
    %99 = vector.load %arg3[%c16, %c0_51] : memref<40x16xf32, #tpu.memory_space<vmem>>, vector<16x16xf32>
    %cst_52 = arith.constant 0.000000e+00 : f32
    %100 = vector.broadcast %cst_52 : f32 to vector<16x32xf32>
    %c352 = arith.constant 352 : index
    %c0_53 = arith.constant 0 : index
    %101 = vector.load %arg4[%c352, %c0_53] : memref<384x32xf32, #tpu.memory_space<vmem>>, vector<1x32xf32>
    %102 = vector.broadcast %101 : vector<1x32xf32> to vector<16x32xf32>
    %103 = arith.mulf %88, %102 : vector<16x32xf32>
    %cst_54 = arith.constant dense<0.000000e+00> : vector<16x16xf32>
    %104 = tpu.matmul %103, %93, %cst_54 {dimension_numbers = #tpu.dot_dimension_numbers<[1], [1], [0], [0], [0, 0, 1, 0], [], []>} : vector<16x32xf32>, vector<16x32xf32>, vector<16x16xf32> -> vector<16x16xf32>
    %105 = arith.addf %104, %99 : vector<16x16xf32>
    %cst_55 = arith.constant dense<0xFF800000> : vector<16xf32>
    %106 = vector.multi_reduction <maximumf>, %105, %cst_55 [1] : vector<16x16xf32> to vector<16xf32>
    %107 = vector.shape_cast %106 : vector<16xf32> to vector<16x1xf32>
    %108 = vector.broadcast %107 : vector<16x1xf32> to vector<16x16xf32>
    %109 = arith.subf %105, %108 : vector<16x16xf32>
    %110 = math.exp %109 : vector<16x16xf32>
    %cst_56 = arith.constant dense<0.000000e+00> : vector<16xf32>
    %111 = vector.multi_reduction <add>, %110, %cst_56 [1] : vector<16x16xf32> to vector<16xf32>
    %112 = vector.shape_cast %111 : vector<16xf32> to vector<16x1xf32>
    %113 = vector.broadcast %112 : vector<16x1xf32> to vector<16x16xf32>
    %114 = arith.divf %110, %113 : vector<16x16xf32>
    %115 = vector.broadcast %101 : vector<1x32xf32> to vector<16x32xf32>
    %116 = arith.mulf %98, %115 : vector<16x32xf32>
    %cst_57 = arith.constant dense<0.000000e+00> : vector<16x32xf32>
    %117 = tpu.matmul %114, %116, %cst_57 {dimension_numbers = #tpu.dot_dimension_numbers<[1], [0], [0], [1], [0, 0, 1, 1], [], []>} : vector<16x16xf32>, vector<16x32xf32>, vector<16x32xf32> -> vector<16x32xf32>
    %118 = arith.addf %100, %117 : vector<16x32xf32>
    %c360 = arith.constant 360 : index
    %c0_58 = arith.constant 0 : index
    %119 = vector.load %arg4[%c360, %c0_58] : memref<384x32xf32, #tpu.memory_space<vmem>>, vector<1x32xf32>
    %120 = vector.broadcast %119 : vector<1x32xf32> to vector<16x32xf32>
    %121 = arith.mulf %88, %120 : vector<16x32xf32>
    %cst_59 = arith.constant dense<0.000000e+00> : vector<16x16xf32>
    %122 = tpu.matmul %121, %93, %cst_59 {dimension_numbers = #tpu.dot_dimension_numbers<[1], [1], [0], [0], [0, 0, 1, 0], [], []>} : vector<16x32xf32>, vector<16x32xf32>, vector<16x16xf32> -> vector<16x16xf32>
    %123 = arith.addf %122, %99 : vector<16x16xf32>
    %cst_60 = arith.constant dense<0xFF800000> : vector<16xf32>
    %124 = vector.multi_reduction <maximumf>, %123, %cst_60 [1] : vector<16x16xf32> to vector<16xf32>
    %125 = vector.shape_cast %124 : vector<16xf32> to vector<16x1xf32>
    %126 = vector.broadcast %125 : vector<16x1xf32> to vector<16x16xf32>
    %127 = arith.subf %123, %126 : vector<16x16xf32>
    %128 = math.exp %127 : vector<16x16xf32>
    %cst_61 = arith.constant dense<0.000000e+00> : vector<16xf32>
    %129 = vector.multi_reduction <add>, %128, %cst_61 [1] : vector<16x16xf32> to vector<16xf32>
    %130 = vector.shape_cast %129 : vector<16xf32> to vector<16x1xf32>
    %131 = vector.broadcast %130 : vector<16x1xf32> to vector<16x16xf32>
    %132 = arith.divf %128, %131 : vector<16x16xf32>
    %133 = vector.broadcast %119 : vector<1x32xf32> to vector<16x32xf32>
    %134 = arith.mulf %98, %133 : vector<16x32xf32>
    %cst_62 = arith.constant dense<0.000000e+00> : vector<16x32xf32>
    %135 = tpu.matmul %132, %134, %cst_62 {dimension_numbers = #tpu.dot_dimension_numbers<[1], [0], [0], [1], [0, 0, 1, 1], [], []>} : vector<16x16xf32>, vector<16x32xf32>, vector<16x32xf32> -> vector<16x32xf32>
    %136 = arith.addf %118, %135 : vector<16x32xf32>
    %c368 = arith.constant 368 : index
    %c0_63 = arith.constant 0 : index
    %137 = vector.load %arg4[%c368, %c0_63] : memref<384x32xf32, #tpu.memory_space<vmem>>, vector<1x32xf32>
    %138 = vector.broadcast %137 : vector<1x32xf32> to vector<16x32xf32>
    %139 = arith.mulf %88, %138 : vector<16x32xf32>
    %cst_64 = arith.constant dense<0.000000e+00> : vector<16x16xf32>
    %140 = tpu.matmul %139, %93, %cst_64 {dimension_numbers = #tpu.dot_dimension_numbers<[1], [1], [0], [0], [0, 0, 1, 0], [], []>} : vector<16x32xf32>, vector<16x32xf32>, vector<16x16xf32> -> vector<16x16xf32>
    %141 = arith.addf %140, %99 : vector<16x16xf32>
    %cst_65 = arith.constant dense<0xFF800000> : vector<16xf32>
    %142 = vector.multi_reduction <maximumf>, %141, %cst_65 [1] : vector<16x16xf32> to vector<16xf32>
    %143 = vector.shape_cast %142 : vector<16xf32> to vector<16x1xf32>
    %144 = vector.broadcast %143 : vector<16x1xf32> to vector<16x16xf32>
    %145 = arith.subf %141, %144 : vector<16x16xf32>
    %146 = math.exp %145 : vector<16x16xf32>
    %cst_66 = arith.constant dense<0.000000e+00> : vector<16xf32>
    %147 = vector.multi_reduction <add>, %146, %cst_66 [1] : vector<16x16xf32> to vector<16xf32>
    %148 = vector.shape_cast %147 : vector<16xf32> to vector<16x1xf32>
    %149 = vector.broadcast %148 : vector<16x1xf32> to vector<16x16xf32>
    %150 = arith.divf %146, %149 : vector<16x16xf32>
    %151 = vector.broadcast %137 : vector<1x32xf32> to vector<16x32xf32>
    %152 = arith.mulf %98, %151 : vector<16x32xf32>
    %cst_67 = arith.constant dense<0.000000e+00> : vector<16x32xf32>
    %153 = tpu.matmul %150, %152, %cst_67 {dimension_numbers = #tpu.dot_dimension_numbers<[1], [0], [0], [1], [0, 0, 1, 1], [], []>} : vector<16x16xf32>, vector<16x32xf32>, vector<16x32xf32> -> vector<16x32xf32>
    %154 = arith.addf %136, %153 : vector<16x32xf32>
    %c376 = arith.constant 376 : index
    %c0_68 = arith.constant 0 : index
    %155 = vector.load %arg4[%c376, %c0_68] : memref<384x32xf32, #tpu.memory_space<vmem>>, vector<1x32xf32>
    %156 = vector.broadcast %155 : vector<1x32xf32> to vector<16x32xf32>
    %157 = arith.mulf %88, %156 : vector<16x32xf32>
    %cst_69 = arith.constant dense<0.000000e+00> : vector<16x16xf32>
    %158 = tpu.matmul %157, %93, %cst_69 {dimension_numbers = #tpu.dot_dimension_numbers<[1], [1], [0], [0], [0, 0, 1, 0], [], []>} : vector<16x32xf32>, vector<16x32xf32>, vector<16x16xf32> -> vector<16x16xf32>
    %159 = arith.addf %158, %99 : vector<16x16xf32>
    %cst_70 = arith.constant dense<0xFF800000> : vector<16xf32>
    %160 = vector.multi_reduction <maximumf>, %159, %cst_70 [1] : vector<16x16xf32> to vector<16xf32>
    %161 = vector.shape_cast %160 : vector<16xf32> to vector<16x1xf32>
    %162 = vector.broadcast %161 : vector<16x1xf32> to vector<16x16xf32>
    %163 = arith.subf %159, %162 : vector<16x16xf32>
    %164 = math.exp %163 : vector<16x16xf32>
    %cst_71 = arith.constant dense<0.000000e+00> : vector<16xf32>
    %165 = vector.multi_reduction <add>, %164, %cst_71 [1] : vector<16x16xf32> to vector<16xf32>
    %166 = vector.shape_cast %165 : vector<16xf32> to vector<16x1xf32>
    %167 = vector.broadcast %166 : vector<16x1xf32> to vector<16x16xf32>
    %168 = arith.divf %164, %167 : vector<16x16xf32>
    %169 = vector.broadcast %155 : vector<1x32xf32> to vector<16x32xf32>
    %170 = arith.mulf %98, %169 : vector<16x32xf32>
    %cst_72 = arith.constant dense<0.000000e+00> : vector<16x32xf32>
    %171 = tpu.matmul %168, %170, %cst_72 {dimension_numbers = #tpu.dot_dimension_numbers<[1], [0], [0], [1], [0, 0, 1, 1], [], []>} : vector<16x16xf32>, vector<16x32xf32>, vector<16x32xf32> -> vector<16x32xf32>
    %172 = arith.addf %154, %171 : vector<16x32xf32>
    %c312 = arith.constant 312 : index
    %c0_73 = arith.constant 0 : index
    %173 = vector.load %arg4[%c312, %c0_73] : memref<384x32xf32, #tpu.memory_space<vmem>>, vector<32x32xf32>
    %cst_74 = arith.constant dense<0.000000e+00> : vector<16x32xf32>
    %174 = tpu.matmul %172, %173, %cst_74 {dimension_numbers = #tpu.dot_dimension_numbers<[1], [0], [0], [1], [0, 0, 1, 1], [], []>} : vector<16x32xf32>, vector<32x32xf32>, vector<16x32xf32> -> vector<16x32xf32>
    %175 = arith.addf %61, %174 : vector<16x32xf32>
    %c344 = arith.constant 344 : index
    %c0_75 = arith.constant 0 : index
    %176 = vector.load %arg4[%c344, %c0_75] : memref<384x32xf32, #tpu.memory_space<vmem>>, vector<1x32xf32>
    %177 = vector.broadcast %176 : vector<1x32xf32> to vector<16x32xf32>
    %178 = arith.addf %175, %177 : vector<16x32xf32>
    %cst_76 = arith.constant dense<0.000000e+00> : vector<16xf32>
    %179 = vector.multi_reduction <add>, %178, %cst_76 [1] : vector<16x32xf32> to vector<16xf32>
    %180 = vector.shape_cast %179 : vector<16xf32> to vector<16x1xf32>
    %cst_77 = arith.constant 3.200000e+01 : f32
    %181 = vector.broadcast %cst_77 : f32 to vector<16x1xf32>
    %182 = arith.divf %180, %181 : vector<16x1xf32>
    %183 = vector.broadcast %182 : vector<16x1xf32> to vector<16x32xf32>
    %184 = arith.subf %178, %183 : vector<16x32xf32>
    %185 = arith.mulf %184, %184 : vector<16x32xf32>
    %cst_78 = arith.constant dense<0.000000e+00> : vector<16xf32>
    %186 = vector.multi_reduction <add>, %185, %cst_78 [1] : vector<16x32xf32> to vector<16xf32>
    %187 = vector.shape_cast %186 : vector<16xf32> to vector<16x1xf32>
    %cst_79 = arith.constant 0.0322580636 : f32
    %188 = vector.broadcast %cst_79 : f32 to vector<16x1xf32>
    %189 = arith.mulf %187, %188 : vector<16x1xf32>
    %c160 = arith.constant 160 : index
    %c0_80 = arith.constant 0 : index
    %190 = vector.load %arg4[%c160, %c0_80] : memref<384x32xf32, #tpu.memory_space<vmem>>, vector<1x32xf32>
    %191 = vector.broadcast %190 : vector<1x32xf32> to vector<16x32xf32>
    %192 = arith.mulf %191, %184 : vector<16x32xf32>
    %193 = math.sqrt %189 : vector<16x1xf32>
    %cst_81 = arith.constant 9.99999997E-7 : f32
    %194 = vector.broadcast %cst_81 : f32 to vector<16x1xf32>
    %195 = arith.addf %193, %194 : vector<16x1xf32>
    %196 = vector.broadcast %195 : vector<16x1xf32> to vector<16x32xf32>
    %197 = arith.divf %192, %196 : vector<16x32xf32>
    %c168 = arith.constant 168 : index
    %c0_82 = arith.constant 0 : index
    %198 = vector.load %arg4[%c168, %c0_82] : memref<384x32xf32, #tpu.memory_space<vmem>>, vector<1x32xf32>
    %199 = vector.broadcast %198 : vector<1x32xf32> to vector<16x32xf32>
    %200 = arith.addf %197, %199 : vector<16x32xf32>
    %cst_83 = arith.constant dense<0.000000e+00> : vector<16xf32>
    %201 = vector.multi_reduction <add>, %200, %cst_83 [1] : vector<16x32xf32> to vector<16xf32>
    %202 = vector.shape_cast %201 : vector<16xf32> to vector<16x1xf32>
    %cst_84 = arith.constant 3.200000e+01 : f32
    %203 = vector.broadcast %cst_84 : f32 to vector<16x1xf32>
    %204 = arith.divf %202, %203 : vector<16x1xf32>
    %205 = vector.broadcast %204 : vector<16x1xf32> to vector<16x32xf32>
    %206 = arith.subf %200, %205 : vector<16x32xf32>
    %207 = arith.mulf %206, %206 : vector<16x32xf32>
    %cst_85 = arith.constant dense<0.000000e+00> : vector<16xf32>
    %208 = vector.multi_reduction <add>, %207, %cst_85 [1] : vector<16x32xf32> to vector<16xf32>
    %209 = vector.shape_cast %208 : vector<16xf32> to vector<16x1xf32>
    %cst_86 = arith.constant 0.0322580636 : f32
    %210 = vector.broadcast %cst_86 : f32 to vector<16x1xf32>
    %211 = arith.mulf %209, %210 : vector<16x1xf32>
    %c176 = arith.constant 176 : index
    %c0_87 = arith.constant 0 : index
    %212 = vector.load %arg4[%c176, %c0_87] : memref<384x32xf32, #tpu.memory_space<vmem>>, vector<1x32xf32>
    %213 = vector.broadcast %212 : vector<1x32xf32> to vector<16x32xf32>
    %214 = arith.mulf %213, %206 : vector<16x32xf32>
    %215 = math.sqrt %211 : vector<16x1xf32>
    %cst_88 = arith.constant 9.99999997E-7 : f32
    %216 = vector.broadcast %cst_88 : f32 to vector<16x1xf32>
    %217 = arith.addf %215, %216 : vector<16x1xf32>
    %218 = vector.broadcast %217 : vector<16x1xf32> to vector<16x32xf32>
    %219 = arith.divf %214, %218 : vector<16x32xf32>
    %c184 = arith.constant 184 : index
    %c0_89 = arith.constant 0 : index
    %220 = vector.load %arg4[%c184, %c0_89] : memref<384x32xf32, #tpu.memory_space<vmem>>, vector<1x32xf32>
    %221 = vector.broadcast %220 : vector<1x32xf32> to vector<16x32xf32>
    %222 = arith.addf %219, %221 : vector<16x32xf32>
    %223 = tpu.concatenate %200, %222 in 1 : vector<16x32xf32>, vector<16x32xf32> -> vector<16x64xf32>
    %c0_90 = arith.constant 0 : index
    %c0_91 = arith.constant 0 : index
    %224 = vector.load %arg6[%c0_90, %c0_91] : memref<208x128xf32, #tpu.memory_space<vmem>>, vector<64x128xf32>
    %cst_92 = arith.constant dense<0.000000e+00> : vector<16x128xf32>
    %225 = tpu.matmul %223, %224, %cst_92 {dimension_numbers = #tpu.dot_dimension_numbers<[1], [0], [0], [1], [0, 0, 1, 1], [], []>} : vector<16x64xf32>, vector<64x128xf32>, vector<16x128xf32> -> vector<16x128xf32>
    %c64_93 = arith.constant 64 : index
    %c0_94 = arith.constant 0 : index
    %226 = vector.load %arg6[%c64_93, %c0_94] : memref<208x128xf32, #tpu.memory_space<vmem>>, vector<1x128xf32>
    %227 = vector.broadcast %226 : vector<1x128xf32> to vector<16x128xf32>
    %228 = arith.addf %225, %227 : vector<16x128xf32>
    %cst_95 = arith.constant 0.000000e+00 : f32
    %229 = vector.broadcast %cst_95 : f32 to vector<16x128xf32>
    %230 = arith.maximumf %228, %229 : vector<16x128xf32>
    %c56 = arith.constant 56 : index
    %c0_96 = arith.constant 0 : index
    %231 = vector.load %arg5[%c56, %c0_96] : memref<712x64xf32, #tpu.memory_space<vmem>>, vector<128x64xf32>
    %cst_97 = arith.constant dense<0.000000e+00> : vector<16x64xf32>
    %232 = tpu.matmul %230, %231, %cst_97 {dimension_numbers = #tpu.dot_dimension_numbers<[1], [0], [0], [1], [0, 0, 1, 1], [], []>} : vector<16x128xf32>, vector<128x64xf32>, vector<16x64xf32> -> vector<16x64xf32>
    %233 = arith.addf %223, %232 : vector<16x64xf32>
    %c184_98 = arith.constant 184 : index
    %c0_99 = arith.constant 0 : index
    %234 = vector.load %arg5[%c184_98, %c0_99] : memref<712x64xf32, #tpu.memory_space<vmem>>, vector<1x64xf32>
    %235 = vector.broadcast %234 : vector<1x64xf32> to vector<16x64xf32>
    %236 = arith.addf %233, %235 : vector<16x64xf32>
    %c0_100 = arith.constant 0 : index
    %c0_101 = arith.constant 0 : index
    %237 = vector.load %arg8[%c0_100, %c0_101] : memref<80x512xf32, #tpu.memory_space<vmem>>, vector<64x512xf32>
    %cst_102 = arith.constant dense<0.000000e+00> : vector<16x512xf32>
    %238 = tpu.matmul %236, %237, %cst_102 {dimension_numbers = #tpu.dot_dimension_numbers<[1], [0], [0], [1], [0, 0, 1, 1], [], []>} : vector<16x64xf32>, vector<64x512xf32>, vector<16x512xf32> -> vector<16x512xf32>
    %c64_103 = arith.constant 64 : index
    %c0_104 = arith.constant 0 : index
    %239 = vector.load %arg8[%c64_103, %c0_104] : memref<80x512xf32, #tpu.memory_space<vmem>>, vector<16x512xf32>
    %240 = arith.mulf %238, %239 : vector<16x512xf32>
    %c192_105 = arith.constant 192 : index
    %c0_106 = arith.constant 0 : index
    %241 = vector.load %arg5[%c192_105, %c0_106] : memref<712x64xf32, #tpu.memory_space<vmem>>, vector<512x64xf32>
    %cst_107 = arith.constant dense<0.000000e+00> : vector<16x64xf32>
    %242 = tpu.matmul %240, %241, %cst_107 {dimension_numbers = #tpu.dot_dimension_numbers<[1], [0], [0], [1], [0, 0, 1, 1], [], []>} : vector<16x512xf32>, vector<512x64xf32>, vector<16x64xf32> -> vector<16x64xf32>
    %c32 = arith.constant 32 : index
    %c0_108 = arith.constant 0 : index
    %243 = vector.load %arg3[%c32, %c0_108] : memref<40x16xf32, #tpu.memory_space<vmem>>, vector<2x16xf32>
    %cst_109 = arith.constant dense<0.000000e+00> : vector<2x64xf32>
    %244 = tpu.matmul %243, %242, %cst_109 {dimension_numbers = #tpu.dot_dimension_numbers<[1], [0], [0], [1], [0, 0, 1, 1], [], []>} : vector<2x16xf32>, vector<16x64xf32>, vector<2x64xf32> -> vector<2x64xf32>
    %c704 = arith.constant 704 : index
    %c0_110 = arith.constant 0 : index
    %245 = vector.load %arg5[%c704, %c0_110] : memref<712x64xf32, #tpu.memory_space<vmem>>, vector<1x64xf32>
    %246 = vector.broadcast %245 : vector<1x64xf32> to vector<2x64xf32>
    %247 = arith.addf %244, %246 : vector<2x64xf32>
    %c0_111 = arith.constant 0 : index
    %c0_112 = arith.constant 0 : index
    %248 = vector.load %arg7[%c0_111, %c0_112] : memref<72x256xf32, #tpu.memory_space<vmem>>, vector<64x256xf32>
    %cst_113 = arith.constant dense<0.000000e+00> : vector<2x256xf32>
    %249 = tpu.matmul %247, %248, %cst_113 {dimension_numbers = #tpu.dot_dimension_numbers<[1], [0], [0], [1], [0, 0, 1, 1], [], []>} : vector<2x64xf32>, vector<64x256xf32>, vector<2x256xf32> -> vector<2x256xf32>
    %c64_114 = arith.constant 64 : index
    %c0_115 = arith.constant 0 : index
    %250 = vector.load %arg7[%c64_114, %c0_115] : memref<72x256xf32, #tpu.memory_space<vmem>>, vector<1x256xf32>
    %251 = vector.broadcast %250 : vector<1x256xf32> to vector<2x256xf32>
    %252 = arith.addf %249, %251 : vector<2x256xf32>
    %253 = vector.extract_strided_slice %252 {offsets = [0, 0], sizes = [2, 128], strides = [1, 1]} : vector<2x256xf32> to vector<2x128xf32>
    %254 = vector.extract_strided_slice %252 {offsets = [0, 128], sizes = [2, 128], strides = [1, 1]} : vector<2x256xf32> to vector<2x128xf32>
    %255 = arith.mulf %253, %254 : vector<2x128xf32>
    %c72_116 = arith.constant 72 : index
    %c0_117 = arith.constant 0 : index
    %256 = vector.load %arg6[%c72_116, %c0_117] : memref<208x128xf32, #tpu.memory_space<vmem>>, vector<128x128xf32>
    %cst_118 = arith.constant dense<0.000000e+00> : vector<2x128xf32>
    %257 = tpu.matmul %255, %256, %cst_118 {dimension_numbers = #tpu.dot_dimension_numbers<[1], [0], [0], [1], [0, 0, 1, 1], [], []>} : vector<2x128xf32>, vector<128x128xf32>, vector<2x128xf32> -> vector<2x128xf32>
    %c200 = arith.constant 200 : index
    %c0_119 = arith.constant 0 : index
    %258 = vector.load %arg6[%c200, %c0_119] : memref<208x128xf32, #tpu.memory_space<vmem>>, vector<1x128xf32>
    %259 = vector.broadcast %258 : vector<1x128xf32> to vector<2x128xf32>
    %260 = arith.addf %257, %259 : vector<2x128xf32>
    %c0_120 = arith.constant 0 : index
    %c0_121 = arith.constant 0 : index
    %261 = vector.load %arg9[%c0_120, %c0_121] : memref<2x128xf32, #tpu.memory_space<vmem>>, vector<2x128xf32>
    tpu.vector_store %arg9[%c0_120, %c0_121], %260 {strides = array<i32>} : memref<2x128xf32, #tpu.memory_space<vmem>>, vector<2x128xf32>,
    return
  }
  func.func @transform_0(%arg0: i32) -> (i32, i32) {
    %c0_i32 = arith.constant 0 : i32
    %c0_i32_0 = arith.constant 0 : i32
    %c0_i32_1 = arith.constant 0 : i32
    return %c0_i32, %c0_i32_0 : i32, i32
  }
  func.func @transform_1(%arg0: i32) -> (i32, i32) {
    %c0_i32 = arith.constant 0 : i32
    %c0_i32_0 = arith.constant 0 : i32
    %c0_i32_1 = arith.constant 0 : i32
    return %c0_i32, %c0_i32_0 : i32, i32
  }
  func.func @transform_2(%arg0: i32) -> (i32, i32) {
    %c0_i32 = arith.constant 0 : i32
    %c0_i32_0 = arith.constant 0 : i32
    %c0_i32_1 = arith.constant 0 : i32
    return %c0_i32, %c0_i32_0 : i32, i32
  }
  func.func @transform_3(%arg0: i32) -> (i32, i32) {
    %c0_i32 = arith.constant 0 : i32
    %c0_i32_0 = arith.constant 0 : i32
    %c0_i32_1 = arith.constant 0 : i32
    return %c0_i32, %c0_i32_0 : i32, i32
  }
  func.func @transform_4(%arg0: i32) -> (i32, i32) {
    %c0_i32 = arith.constant 0 : i32
    %c0_i32_0 = arith.constant 0 : i32
    %c0_i32_1 = arith.constant 0 : i32
    return %c0_i32, %c0_i32_0 : i32, i32
  }
  func.func @transform_5(%arg0: i32) -> (i32, i32) {
    %c0_i32 = arith.constant 0 : i32
    %c0_i32_0 = arith.constant 0 : i32
    %c0_i32_1 = arith.constant 0 : i32
    return %c0_i32, %c0_i32_0 : i32, i32
  }
  func.func @transform_6(%arg0: i32) -> (i32, i32) {
    %c0_i32 = arith.constant 0 : i32
    %c0_i32_0 = arith.constant 0 : i32
    %c0_i32_1 = arith.constant 0 : i32
    return %c0_i32, %c0_i32_0 : i32, i32
  }
  func.func @transform_7(%arg0: i32) -> (i32, i32) {
    %c0_i32 = arith.constant 0 : i32
    %c0_i32_0 = arith.constant 0 : i32
    %c0_i32_1 = arith.constant 0 : i32
    return %c0_i32, %c0_i32_0 : i32, i32
  }
  func.func @transform_8(%arg0: i32) -> (i32, i32) {
    %c0_i32 = arith.constant 0 : i32
    %c0_i32_0 = arith.constant 0 : i32
    %c0_i32_1 = arith.constant 0 : i32
    return %c0_i32, %c0_i32_0 : i32, i32
  }
}

</mosaic_0001>

<bundles_post_ra>
// kernel: _lambda_.1
= control target key start
LH: loop header
LB: loop body
LE: loop exit
PB: predicated region body
PF: predicated region fallthrough
CT: control target
= control target key end

     0   :  { %vm43_vm0 = vcmask 326656   ;;  %s3157_s0 = inlined_call_operand.vmem [shape: f32[64,40], index: 0, kind: input, shape index: {}]   ;;  %s3158_s1 = inlined_call_operand.vmem [shape: f32[32,12], index: 1, kind: input, shape index: {}]   ;;  %s3159_s2 = inlined_call_operand.vmem [shape: f32[40,16], index: 2, kind: input, shape index: {}]   ;;  %s3160_s3 = inlined_call_operand.vmem [shape: f32[384,32], index: 3, kind: input, shape index: {}]   ;;  %s3161_s4 = inlined_call_operand.vmem [shape: f32[712,64], index: 4, kind: input, shape index: {}]   ;;  %s3162_s5 = inlined_call_operand.vmem [shape: f32[208,128], index: 5, kind: input, shape index: {}]   ;;  %s3163_s6 = inlined_call_operand.vmem [shape: f32[72,256], index: 6, kind: input, shape index: {}]   ;;  %s3164_s7 = inlined_call_operand.vmem [shape: f32[80,512], index: 7, kind: input, shape index: {}]   ;;  %s3165_s8 = inlined_call_operand.hbm [shape: f32[2,128], index: 8, kind: output, shape index: {}]  }
   0x1   :  { %v42_v0 = vld [vmem:[%s3161_s4 + $0x20] sm:$0xff]  ;;  %v41_v1 = vld [vmem:[%s3161_s4 + $0x18] sm:$0xff]  ;;  %v40_v2 = vld [vmem:[%s3161_s4 + $0x10] sm:$0xff] }
   0x2   :  { %79 = vmatpush.msra.mxu0 %v42_v0  ;;  %v39_v3 = vld [vmem:[%s3161_s4 + $0x8] sm:$0xff]  ;;  %v38_v4 = vld [vmem:[%s3161_s4] sm:$0xff] }
   0x3   :  { %v30_v5 = vld [vmem:[%s3157_s0] sm:$0xff] }
   0x4   :  { %80 = vmatpush.msra.mxu0 %v41_v1 }
   0x6   :  { %81 = vmatpush.msra.mxu0 %v40_v2 }
   0x8   :  { %82 = vmatpush.msra.mxu0 %v39_v3 }
   0xa   :  { %83 = vmatpush.msra.mxu0 %v38_v4 }
   0xb   :  { %1907 = vmatmul.msk.f32.vlgmr.msra.gmra.mxu0 %vm43_vm0, %v30_v5 }
   0xc   :  { %13 = vsyncpa [#allocation3], 0  ;;  %v31_v6 = vld [vmem:[%s3157_s0 + $0x8] sm:$0xff]  ;;  %v32_v7 = vld [vmem:[%s3157_s0 + $0x10] sm:$0xff]  ;;  %vm119_vm1 = vcmask 523264   ;;  %vm285_vm2 = vcmask 1043456  }
   0xd   :  { %v33_v8 = vld [vmem:[%s3157_s0 + $0x18] sm:$0xff]  ;;  %v115_v10 = vld [vmem:[%s3160_s3 + $0x30] sm:$0xff]  ;;  %v114_v11 = vld [vmem:[%s3160_s3 + $0x28] sm:$0xff]  ;;  %vm272_vm3 = vcmask 97280   ;;  %vm322_vm12 = vcmask 130048   ;;  %vm390_vm13 = vcmask 261120  }
   0xe   :  { %v116_v9 = vld [vmem:[%s3160_s3 + $0x38] sm:$0xff]  ;;  %v113_v12 = vld [vmem:[%s3160_s3 + $0x20] sm:$0xff]  ;;  %v111_v15 = vld [vmem:[%s3160_s3 + $0x10] sm:$0xff]  ;;  %s2140_s19 = smov 32   ;;  %s2141_s30 = smov [#allocation2]  }
   0xf   :  { %152 = vmatpush.msra.mxu1 %v116_v9  ;;  %v34_v13 = vld [vmem:[%s3157_s0 + $0x20] sm:$0xff]  ;;  %v112_v14 = vld [vmem:[%s3160_s3 + $0x18] sm:$0xff]  ;;  %v110_v16 = vld [vmem:[%s3160_s3 + $0x8] sm:$0xff]  ;;  %s1896_s9 = sshll.u32 %s2141_s30, 4  ;;  %s1898_s12 = sshll.u32 %s3165_s8, 4  ;;  %s1897_s9 = int_to_ptr.vmem [resolvable:$true] %s1896_s9  ;;  %s1899_s12 = int_to_ptr.hbm [resolvable:$true] %s1898_s12 }
  0x10   :  { %v35_v17 = vld [vmem:[%s3157_s0 + $0x28] sm:$0xff]  ;;  %v36_v18 = vld [vmem:[%s3157_s0 + $0x30] sm:$0xff]  ;;  %v37_v19 = vld [vmem:[%s3157_s0 + $0x38] sm:$0xff] }
  0x11   :  { %153 = vmatpush.msra.mxu1 %v115_v10  ;;  %v109_v20 = vld [vmem:[%s3160_s3] sm:$0xff]  ;;  %v271_v24 = vld [vmem:[%s3159_s2 + $0x8] sm:$0xf]  ;;  %v268_v29 = vld [vmem:[%s3158_s1 + $0x10] sm:$0xff] }
  0x12   :  { %1933 = vmatpush.msk.msrb.mxu0 %vm285_vm2, %v271_v24  ;;  %1995 = vmatpush.msk.msra.mxu3 %vm285_vm2, %v271_v24  ;;  %v270_v26 = vld [vmem:[%s3159_s2] sm:$0xff]  ;;  %v269_v30 = vld [vmem:[%s3158_s1 + $0x18] sm:$0xff]  ;;  %v267_v34 = vld [vmem:[%s3158_s1 + $0x8] sm:$0xff] }
  0x13   :  { %1908 = vmatmul.msk.f32.gmra.mxu0 %vm43_vm0, %v31_v6  ;;  %154 = vmatpush.msra.mxu1 %v114_v11  ;;  %v266_v27 = vld [vmem:[%s3158_s1] sm:$0xff] }
  0x14   :  { %304 = vmatpush.msrb.mxu0 %v270_v26  ;;  %1997 = vmatpush.msra.mxu3 %v270_v26  ;;  %v2001_v41 = vld [vmem:[%s3160_s3 + $0x40] ss:$0 sm:$0xff] }
  0x15   :  { %155 = vmatpush.msra.mxu1 %v113_v12  ;;  %1936 = vmatmul.msk.f32.vlgmr.msra.gmra.mxu3 %vm272_vm3, %v268_v29  ;;  %v319_v29 = vld [vmem:[%s3160_s3 + $0x50] sm:$0xff] }
  0x17   :  { %156 = vmatpush.msra.mxu1 %v112_v14 }
  0x19   :  { %157 = vmatpush.msra.mxu1 %v111_v15 }
  0x1b   :  { %1909 = vmatmul.msk.f32.gmra.mxu0 %vm43_vm0, %v32_v7  ;;  %158 = vmatpush.msra.mxu1 %v110_v16 }
  0x1d   :  { %159 = vmatpush.msra.mxu1 %v109_v20  ;;  %1937 = vmatmul.msk.f32.gmra.mxu3 %vm272_vm3, %v269_v30  ;;  %v318_v30 = vld [vmem:[%s3160_s3 + $0x48] sm:$0xff] }
  0x1f   :  { %1994 = vmatpush.msk.msrb.mxu1 %vm285_vm2, %v271_v24 }
  0x21   :  { %1996 = vmatpush.msrb.mxu1 %v270_v26 }
  0x23   :  { %1910 = vmatmul.msk.f32.gmra.mxu0 %vm43_vm0, %v33_v8 }
  0x2b   :  { %1911 = vmatmul.msk.f32.gmra.mxu0 %vm43_vm0, %v34_v13 }
  0x33   :  { %1912 = vmatmul.msk.f32.gmra.mxu0 %vm43_vm0, %v35_v17 }
  0x3b   :  { %1913 = vmatmul.msk.f32.gmra.mxu0 %vm43_vm0, %v36_v18 }
  0x43   :  { %1914 = vmatmul.msk.f32.gmra.mxu0 %vm43_vm0, %v37_v19 }
  0x4b   :  { %1934 = vmatmul.msk.f32.vlgmr.msrb.gmra.mxu0 %vm272_vm3, %v266_v27  ;;  %v233_v27 = vld [vmem:[%s3161_s4 + $0x28] sm:$0xff] }
  0x88   :  { %v85_v21 = vpop.f32.mrf.mxu0 }
  0x89   :  { %1915 = vmatmul.msk.f32.vlgmr.msra.gmra.mxu1 %vm119_vm1, %v85_v21 }
  0x90   :  { %v88_v22 = vpop.f32.mrf.mxu0 }
  0x91   :  { %1916 = vmatmul.msk.f32.gmra.mxu1 %vm119_vm1, %v88_v22 }
  0x98   :  { %v91_v23 = vpop.f32.mrf.mxu0 }
  0x99   :  { %1917 = vmatmul.msk.f32.gmra.mxu1 %vm119_vm1, %v91_v23 }
  0xa0   :  { %v94_v25 = vpop.f32.mrf.mxu0 }
  0xa1   :  { %1918 = vmatmul.msk.f32.gmra.mxu1 %vm119_vm1, %v94_v25 }
  0xa8   :  { %v97_v28 = vpop.f32.mrf.mxu0 }
  0xa9   :  { %1919 = vmatmul.msk.f32.gmra.mxu1 %vm119_vm1, %v97_v28 }
  0xb0   :  { %v100_v31 = vpop.f32.mrf.mxu0 }
  0xb1   :  { %1920 = vmatmul.msk.f32.gmra.mxu1 %vm119_vm1, %v100_v31  ;;  %v234_v31 = vld [vmem:[%s3161_s4 + $0x30] sm:$0xff] }
  0xb8   :  { %v103_v32 = vpop.f32.mrf.mxu0 }
  0xb9   :  { %1921 = vmatmul.msk.f32.gmra.mxu1 %vm119_vm1, %v103_v32 }
  0xc0   :  { %v106_v33 = vpop.f32.mrf.mxu0 }
  0xc1   :  { %1922 = vmatmul.msk.f32.gmra.mxu1 %vm119_vm1, %v106_v33 }
  0xc8   :  { %v306_v32 = vpop.f32.mrf.mxu0 }
  0xc9   :  { %1935 = vmatmul.msk.f32.vlgmr.msrb.gmra.mxu1 %vm272_vm3, %v267_v34  ;;  %v312_v34 = vpop.f32.mrf.mxu3 }
 0x106   :  { %v161_v35 = vpop.f32.mrf.mxu1 }
 0x107   :  { %v162_v58 = vadd.f32 %v2001_v41, %v161_v35  ;;  %v315_v35 = vpop.f32.mrf.mxu3 }
 0x109   :  { %v193_v0 = vmin.f32 %v162_v58, 0.0  ;;  %vm185_vm11 = vcmp.gt.f32.partialorder %v162_v58, 0.0 }
 0x10b   :  { %v201_v6 = vmul.f32 1.442695, %v193_v0 }
 0x10e   :  { %v164_v36 = vpop.f32.mrf.mxu1 }
 0x10f   :  { %v165_v55 = vadd.f32 %v2001_v41, %v164_v36  ;;  %v2312_v36 = vld [vmem:[%s3160_s3 + $0x70] sm:$0xff] }
 0x111   :  { %v194_v62 = vmin.f32 %v165_v55, 0.0  ;;  %vm186_vm10 = vcmp.gt.f32.partialorder %v165_v55, 0.0 }
 0x113   :  { %v203_v3 = vmul.f32 1.442695, %v194_v62 }
 0x116   :  { %v167_v37 = vpop.f32.mrf.mxu1 }
 0x117   :  { %v168_v50 = vadd.f32 %v2001_v41, %v167_v37 }
 0x119   :  { %v195_v59 = vmin.f32 %v168_v50, 0.0  ;;  %vm187_vm9 = vcmp.gt.f32.partialorder %v168_v50, 0.0 }
 0x11b   :  { %v205_v1 = vmul.f32 1.442695, %v195_v59 }
 0x11e   :  { %v170_v38 = vpop.f32.mrf.mxu1 }
 0x11f   :  { %v171_v48 = vadd.f32 %v2001_v41, %v170_v38 }
 0x121   :  { %v196_v56 = vmin.f32 %v171_v48, 0.0  ;;  %vm188_vm8 = vcmp.gt.f32.partialorder %v171_v48, 0.0 }
 0x123   :  { %v207_v63 = vmul.f32 1.442695, %v196_v56 }
 0x126   :  { %v173_v39 = vpop.f32.mrf.mxu1 }
 0x127   :  { %v174_v45 = vadd.f32 %v2001_v41, %v173_v39 }
 0x129   :  { %v197_v51 = vmin.f32 %v174_v45, 0.0  ;;  %vm189_vm7 = vcmp.gt.f32.partialorder %v174_v45, 0.0 }
 0x12b   :  { %v209_v60 = vmul.f32 1.442695, %v197_v51 }
 0x12e   :  { %v176_v40 = vpop.f32.mrf.mxu1 }
 0x12f   :  { %v177_v44 = vadd.f32 %v2001_v41, %v176_v40  ;;  %v2322_v40 = vld [vmem:[%s3160_s3 + $0x78] sm:$0xff] }
 0x131   :  { %v198_v47 = vmin.f32 %v177_v44, 0.0  ;;  %vm190_vm6 = vcmp.gt.f32.partialorder %v177_v44, 0.0 }
 0x133   :  { %v211_v54 = vmul.f32 1.442695, %v198_v47 }
 0x136   :  { %v179_v42 = vpop.f32.mrf.mxu1 }
 0x137   :  { %v180_v43 = vadd.f32 %v2001_v41, %v179_v42 }
 0x139   :  { %v199_v46 = vmin.f32 %v180_v43, 0.0  ;;  %vm191_vm5 = vcmp.gt.f32.partialorder %v180_v43, 0.0 }
 0x13b   :  { %v213_v52 = vmul.f32 1.442695, %v199_v46  ;;  %v2002_v46 = vld [vmem:[%s3160_s3 + $0x58] ss:$0 sm:$0xff] }
 0x13d   :  { %2023 = vpow2.f32 %v213_v52 }
 0x13e   :  { %v182_v49 = vpop.f32.mrf.mxu1  ;;  %2025 = vpow2.f32 %v211_v54 }
 0x13f   :  { %v183_v53 = vadd.f32 %v2001_v41, %v182_v49 }
 0x141   :  { %v200_v57 = vmin.f32 %v183_v53, 0.0  ;;  %vm192_vm4 = vcmp.gt.f32.partialorder %v183_v53, 0.0 }
 0x143   :  { %v215_v61 = vmul.f32 1.442695, %v200_v57  ;;  %v2024_v2 = vpop.eup %2023 }
 0x144   :  { %v2026_v4 = vpop.eup %2025  ;;  %v1929_v8 = vadd.f32 -1.0, %v2024_v2 }
 0x145   :  { %2027 = vpow2.f32 %v215_v61  ;;  %v1928_v11 = vadd.f32 -1.0, %v2026_v4 }
 0x146   :  { %2029 = vpow2.f32 %v209_v60  ;;  %v231_v13 = vsel %vm191_vm5, %v180_v43, %v1929_v8  ;;  %v309_v33 = vpop.f32.mrf.mxu1  ;;  %v388_v8 = vld [vmem:[%s3160_s3 + $0x60] sm:$0xff] }
 0x147   :  { %2031 = vpow2.f32 %v207_v63  ;;  %v230_v16 = vsel %vm190_vm6, %v177_v44, %v1928_v11  ;;  %v2139_v11 = vmov 32.0  }
 0x148   :  { %2033 = vpow2.f32 %v205_v1 }
 0x149   :  { %2035 = vpow2.f32 %v203_v3 }
 0x14a   :  { %2037 = vpow2.f32 %v201_v6 }
 0x14b   :  { %v2028_v5 = vpop.eup %2027 }
 0x14c   :  { %v1930_v7 = vadd.f32 -1.0, %v2028_v5  ;;  %v2030_v9 = vpop.eup %2029 }
 0x14d   :  { %v2032_v12 = vpop.eup %2031  ;;  %v1927_v14 = vadd.f32 -1.0, %v2030_v9 }
 0x14e   :  { %v232_v10 = vsel %vm192_vm4, %v183_v53, %v1930_v7  ;;  %v2034_v15 = vpop.eup %2033  ;;  %v1926_v17 = vadd.f32 -1.0, %v2032_v12 }
 0x14f   :  { %251 = vmatpush.msra.mxu2 %v232_v10  ;;  %v2036_v18 = vpop.eup %2035  ;;  %v229_v19 = vsel %vm189_vm7, %v174_v45, %v1927_v14  ;;  %v1925_v20 = vadd.f32 -1.0, %v2034_v15  ;;  %v389_v10 = vld [vmem:[%s3160_s3 + $0x68] sm:$0xff] }
 0x150   :  { %v2038_v21 = vpop.eup %2037  ;;  %v228_v22 = vsel %vm188_vm8, %v171_v48, %v1926_v17  ;;  %v1924_v23 = vadd.f32 -1.0, %v2036_v18 }
 0x151   :  { %252 = vmatpush.msra.mxu2 %v231_v13  ;;  %v227_v24 = vsel %vm187_vm9, %v168_v50, %v1925_v20  ;;  %v1923_v25 = vadd.f32 -1.0, %v2038_v21 }
 0x152   :  { %v226_v26 = vsel %vm186_vm10, %v165_v55, %v1924_v23 }
 0x153   :  { %253 = vmatpush.msra.mxu2 %v230_v16  ;;  %v225_v28 = vsel %vm185_vm11, %v162_v58, %v1923_v25 }
 0x155   :  { %254 = vmatpush.msra.mxu2 %v229_v19 }
 0x157   :  { %255 = vmatpush.msra.mxu2 %v228_v22 }
 0x159   :  { %256 = vmatpush.msra.mxu2 %v227_v24 }
 0x15b   :  { %257 = vmatpush.msra.mxu2 %v226_v26 }
 0x15d   :  { %258 = vmatpush.msra.mxu2 %v225_v28 }
 0x15e   :  { %1931 = vmatmul.msk.f32.vlgmr.msra.gmra.mxu2 %vm119_vm1, %v233_v27 }
 0x15f   :  { %349 = vmatpush.msrb.mxu2 %v319_v29 }
 0x161   :  { %350 = vmatpush.msrb.mxu2 %v318_v30 }
 0x166   :  { %1932 = vmatmul.msk.f32.gmra.mxu2 %vm119_vm1, %v234_v31 }
 0x16e   :  { %1938 = vmatmul.msk.f32.vlgmr.msrb.gmra.mxu2 %vm322_vm12, %v306_v32 }
 0x176   :  { %1939 = vmatmul.msk.f32.gmra.mxu2 %vm322_vm12, %v309_v33 }
 0x17e   :  { %1940 = vmatmul.msk.f32.gmra.mxu2 %vm322_vm12, %v312_v34 }
 0x186   :  { %1941 = vmatmul.msk.f32.gmra.mxu2 %vm322_vm12, %v315_v35 }
 0x1e1   :  { %v260_v37 = vpop.f32.mrf.mxu2 }
 0x1e2   :  { %v2315_v38 = vadd.f32 %v260_v37, %v2312_v36 }
 0x1e4   :  { %v420_v39 = vsel %vm390_vm13, %v2315_v38, 0.0 }
 0x1e5   :  { %421 = vadd.xlane.f32.xlu1 %v420_v39 }
 0x1e9   :  { %v263_v41 = vpop.f32.mrf.mxu2 }
 0x1ea   :  { %v264_v42 = vadd.f32 %v263_v41, %v2322_v40 }
 0x1ec   :  { %v423_v43 = vsel %vm390_vm13, %v264_v42, 0.0 }
 0x1ed   :  { %424 = vadd.xlane.f32.xlu1 %v423_v43 }
 0x1f1   :  { %v352_v44 = vpop.f32.mrf.mxu2 }
 0x1f2   :  { %v353_v50 = vadd.f32 %v2002_v46, %v352_v44 }
 0x1f4   :  { %v368_v54 = vmin.f32 %v353_v50, 0.0  ;;  %vm364_vm2 = vcmp.gt.f32.partialorder %v353_v50, 0.0 }
 0x1f6   :  { %v372_v59 = vmul.f32 1.442695, %v368_v54 }
 0x1f9   :  { %v355_v45 = vpop.f32.mrf.mxu2 }
 0x1fa   :  { %v356_v49 = vadd.f32 %v2002_v46, %v355_v45 }
 0x1fc   :  { %v369_v52 = vmin.f32 %v356_v49, 0.0  ;;  %vm365_vm0 = vcmp.gt.f32.partialorder %v356_v49, 0.0 }
 0x1fe   :  { %v374_v57 = vmul.f32 1.442695, %v369_v52 }
 0x201   :  { %v358_v47 = vpop.f32.mrf.mxu2 }
 0x202   :  { %v359_v48 = vadd.f32 %v2002_v46, %v358_v47  ;;  %v598_v47 = vld [vmem:[%s3160_s3 + $0xd8] sm:$0xff] }
 0x204   :  { %v370_v51 = vmin.f32 %v359_v48, 0.0  ;;  %vm366_vm15 = vcmp.gt.f32.partialorder %v359_v48, 0.0 }
 0x206   :  { %v376_v55 = vmul.f32 1.442695, %v370_v51  ;;  %v596_v51 = vld [vmem:[%s3160_s3 + $0xc8] sm:$0xff] }
 0x208   :  { %2039 = vpow2.f32 %v376_v55 }
 0x209   :  { %v361_v53 = vpop.f32.mrf.mxu2  ;;  %2041 = vpow2.f32 %v374_v57 }
 0x20a   :  { %v362_v56 = vadd.f32 %v2002_v46, %v361_v53  ;;  %v595_v53 = vld [vmem:[%s3160_s3 + $0xc0] sm:$0xff] }
 0x20c   :  { %v371_v58 = vmin.f32 %v362_v56, 0.0  ;;  %vm367_vm14 = vcmp.gt.f32.partialorder %v362_v56, 0.0 }
 0x20e   :  { %v378_v60 = vmul.f32 1.442695, %v371_v58  ;;  %v2040_v61 = vpop.eup %2039 }
 0x20f   :  { %v2042_v62 = vpop.eup %2041  ;;  %v1944_v1 = vadd.f32 -1.0, %v2040_v61 }
 0x210   :  { %2043 = vpow2.f32 %v378_v60  ;;  %v1943_v4 = vadd.f32 -1.0, %v2042_v62 }
 0x211   :  { %2045 = vpow2.f32 %v372_v59  ;;  %v386_v5 = vsel %vm366_vm15, %v359_v48, %v1944_v1  ;;  %v597_v48 = vld [vmem:[%s3160_s3 + $0xd0] sm:$0xff] }
 0x212   :  { %v385_v7 = vsel %vm365_vm0, %v356_v49, %v1943_v4  ;;  %2047 = vrcp.f32 %v2139_v11 }
 0x216   :  { %v2044_v63 = vpop.eup %2043 }
 0x217   :  { %v1945_v0 = vadd.f32 -1.0, %v2044_v63  ;;  %v2046_v2 = vpop.eup %2045 }
 0x218   :  { %v1942_v6 = vadd.f32 -1.0, %v2046_v2  ;;  %v2048_v12 = vpop.eup %2047 }
 0x219   :  { %v387_v3 = vsel %vm367_vm14, %v362_v56, %v1945_v0  ;;  %v427_v13 = vmul.f32 32.0, %v2048_v12  ;;  %vm431_vm3 = vweird.f32 %v2048_v12 }
 0x21a   :  { %409 = vmatpush.msrb.mxu3 %v387_v3  ;;  %v384_v9 = vsel %vm364_vm2, %v353_v50, %v1942_v6 }
 0x21b   :  { %v428_v14 = vsub.f32 1.0, %v427_v13 }
 0x21c   :  { %410 = vmatpush.msrb.mxu3 %v386_v5 }
 0x21d   :  { %v429_v15 = vmul.f32 %v2048_v12, %v428_v14 }
 0x21e   :  { %411 = vmatpush.msrb.mxu3 %v385_v7 }
 0x21f   :  { %v430_v17 = vadd.f32 %v2048_v12, %v429_v15 }
 0x220   :  { %412 = vmatpush.msrb.mxu3 %v384_v9 }
 0x221   :  { %1946 = vmatmul.msk.f32.vlgmr.msrb.gmra.mxu3 %vm390_vm13, %v388_v8  ;;  %v2337_v18 = vsel %vm431_vm3, %v2048_v12, %v430_v17  ;;  %v2003_v17 = vld [vmem:[%s3160_s3 + $0x80] ss:$0 sm:$0xff] }
 0x222   :  { %619 = vmatpush.msra.mxu3 %v598_v47  ;;  %v630_v47 = vld [vmem:[%s3160_s3 + $0xe8] sm:$0xff] }
 0x224   :  { %620 = vmatpush.msra.mxu3 %v597_v48  ;;  %v665_v48 = vld [vmem:[%s3160_s3 + $0x110] sm:$0xff] }
 0x226   :  { %621 = vmatpush.msra.mxu3 %v596_v51 }
 0x228   :  { %622 = vmatpush.msra.mxu3 %v595_v53 }
 0x229   :  { %1947 = vmatmul.msk.f32.gmra.mxu3 %vm390_vm13, %v389_v10 }
 0x258   :  { %v422_v16 = vpop.xlane.xlu1 %421 }
 0x259   :  { %v433_v27 = vmul.f32 %v2337_v18, %v422_v16 }
 0x25b   :  { %v2350_v30 = vsub.f32 %v2315_v38, %v433_v27 }
 0x25d   :  { %v437_v32 = vmul.f32 %v2350_v30, %v2350_v30 }
 0x25f   :  { %v439_v33 = vsel %vm390_vm13, %v437_v32, 0.0 }
 0x260   :  { %v425_v19 = vpop.xlane.xlu1 %424 }
 0x261   :  { %v434_v20 = vmul.f32 %v2337_v18, %v425_v19 }
 0x263   :  { %v2340_v21 = vsub.f32 %v264_v42, %v434_v20 }
 0x265   :  { %v438_v22 = vmul.f32 %v2340_v21, %v2340_v21 }
 0x267   :  { %v442_v23 = vsel %vm390_vm13, %v438_v22, 0.0 }
 0x268   :  { %443 = vadd.xlane.f32.xlu1 %v442_v23 }
 0x2a4   :  { %v414_v24 = vpop.f32.mrf.mxu3 }
 0x2a5   :  { %v415_v25 = vadd.f32 %v414_v24, %v2312_v36 }
 0x2a7   :  { %v511_v26 = vsel %vm390_vm13, %v415_v25, 0.0 }
 0x2a8   :  { %512 = vadd.xlane.f32.xlu0 %v511_v26 }
 0x2ac   :  { %v417_v28 = vpop.f32.mrf.mxu3 }
 0x2ad   :  { %v418_v29 = vadd.f32 %v417_v28, %v2322_v40 }
 0x2af   :  { %v514_v31 = vsel %vm390_vm13, %v418_v29, 0.0 }
 0x2b0   :  { %515 = vadd.xlane.f32.xlu0 %v514_v31 }
 0x2b8   :  { %440 = vadd.xlane.f32.xlu0 %v439_v33  ;;  %v2005_v33 = vld [vmem:[%s3160_s3 + $0x88] ss:$0 sm:$0xff] }
 0x2db   :  { %v444_v34 = vpop.xlane.xlu1 %443 }
 0x2dc   :  { %v446_v35 = vmul.f32 0.032258064, %v444_v34 }
 0x2de   :  { %2049 = vrsqrt.f32 %v446_v35  ;;  %vm470_vm4 = vcmp.eq.f32.partialorder %v446_v35, inf  ;;  %v473_v61 = vand.u32 2147483648, %v446_v35  ;;  %vm472_vm5 = vcmp.eq.f32.partialorder %v446_v35, 0.0 }
 0x2e4   :  { %v2050_v36 = vpop.eup %2049 }
 0x2e5   :  { %v464_v37 = vmul.f32 %v2050_v36, %v446_v35 }
 0x2e7   :  { %v465_v38 = vmul.f32 %v2050_v36, %v464_v37  ;;  %v450_v37 = vmul.f32 %v2003_v17, %v2340_v21  ;;  %v668_v21 = vld [vmem:[%s3160_s3 + $0x128] sm:$0xff] }
 0x2e8   :  { %683 = vmatpush.msrb.mxu3 %v668_v21 }
 0x2e9   :  { %v466_v44 = vmul.f32 0.5, %v465_v38  ;;  %v633_v38 = vld [vmem:[%s3160_s3 + $0x100] sm:$0xff] }
 0x2ea   :  { %654 = vmatpush.msra.mxu2 %v633_v38 }
 0x2eb   :  { %v467_v50 = vsub.f32 1.5, %v466_v44  ;;  %v631_v44 = vld [vmem:[%s3160_s3 + $0xf0] sm:$0xff] }
 0x2ed   :  { %v468_v55 = vmul.f32 %v2050_v36, %v467_v50 }
 0x2ef   :  { %v469_v58 = vmul.f32 %v468_v55, %v446_v35 }
 0x2f1   :  { %v471_v59 = vsel %vm470_vm4, %v446_v35, %v469_v58 }
 0x2f2   :  { %v474_v63 = vsel %vm472_vm5, %v473_v61, %v471_v59 }
 0x2f3   :  { %v476_v2 = vadd.f32 1e-06, %v474_v63 }
 0x2f5   :  { %v503_v27 = vand.u32 2147483648, %v476_v2  ;;  %vm497_vm15 = vweird.f32 %v476_v2 }
 0x2f7   :  { %v504_v35 = vor.u32 1.1754944e-38, %v503_v27 }
 0x31b   :  { %v513_v39 = vpop.xlane.xlu0 %512 }
 0x31c   :  { %v517_v40 = vmul.f32 %v513_v39, %v2337_v18 }
 0x31e   :  { %v2357_v41 = vsub.f32 %v415_v25, %v517_v40  ;;  %v449_v25 = vmul.f32 %v2003_v17, %v2350_v30 }
 0x320   :  { %v521_v42 = vmul.f32 %v2357_v41, %v2357_v41 }
 0x322   :  { %v523_v43 = vsel %vm390_vm13, %v521_v42, 0.0  ;;  %v632_v42 = vld [vmem:[%s3160_s3 + $0xf8] sm:$0xff] }
 0x323   :  { %524 = vadd.xlane.f32.xlu2 %v523_v43  ;;  %v516_v45 = vpop.xlane.xlu0 %515  ;;  %v667_v43 = vld [vmem:[%s3160_s3 + $0x120] sm:$0xff]  ;;  %655 = vmatpush.msra.mxu2 %v632_v42 }
 0x324   :  { %v518_v46 = vmul.f32 %v516_v45, %v2337_v18  ;;  %v666_v45 = vld [vmem:[%s3160_s3 + $0x118] sm:$0xff]  ;;  %684 = vmatpush.msrb.mxu3 %v667_v43 }
 0x325   :  { %656 = vmatpush.msra.mxu2 %v631_v44 }
 0x326   :  { %v2369_v49 = vsub.f32 %v418_v29, %v518_v46  ;;  %v501_v29 = vand.u32 2147483647, %v476_v2  ;;  %685 = vmatpush.msrb.mxu3 %v666_v45 }
 0x327   :  { %657 = vmatpush.msra.mxu2 %v630_v47 }
 0x328   :  { %v522_v52 = vmul.f32 %v2369_v49, %v2369_v49  ;;  %vm502_vm2 = vcmp.eq.f32.partialorder %v501_v29, 8.507059e+37  ;;  %686 = vmatpush.msrb.mxu3 %v665_v48 }
 0x32a   :  { %v526_v54 = vsel %vm390_vm13, %v522_v52, 0.0 }
 0x32b   :  { %527 = vadd.xlane.f32.xlu2 %v526_v54  ;;  %v441_v56 = vpop.xlane.xlu0 %440 }
 0x32c   :  { %v445_v57 = vmul.f32 0.032258064, %v441_v56 }
 0x32e   :  { %2051 = vrsqrt.f32 %v445_v57  ;;  %vm458_vm6 = vcmp.eq.f32.partialorder %v445_v57, inf  ;;  %v461_v6 = vand.u32 2147483648, %v445_v57  ;;  %vm460_vm7 = vcmp.eq.f32.partialorder %v445_v57, 0.0 }
 0x32f   :  { %2053 = vrcp.f32 %v476_v2 }
 0x334   :  { %v2052_v60 = vpop.eup %2051 }
 0x335   :  { %v452_v62 = vmul.f32 %v2052_v60, %v445_v57  ;;  %v2054_v9 = vpop.eup %2053 }
 0x336   :  { %v493_v11 = vmul.f32 %v2054_v9, %v476_v2  ;;  %vm498_vm10 = vweird.f32 %v2054_v9 }
 0x337   :  { %v453_v0 = vmul.f32 %v2052_v60, %v452_v62  ;;  %vm499_vm0 = vmor %vm497_vm15, %vm498_vm10 }
 0x338   :  { %v494_v12 = vsub.f32 1.0, %v493_v11 }
 0x339   :  { %v454_v1 = vmul.f32 0.5, %v453_v0 }
 0x33a   :  { %v495_v16 = vmul.f32 %v2054_v9, %v494_v12 }
 0x33b   :  { %v455_v3 = vsub.f32 1.5, %v454_v1 }
 0x33c   :  { %v496_v24 = vadd.f32 %v2054_v9, %v495_v16 }
 0x33d   :  { %v456_v4 = vmul.f32 %v2052_v60, %v455_v3 }
 0x33e   :  { %v500_v34 = vsel %vm499_vm0, %v2054_v9, %v496_v24 }
 0x33f   :  { %v457_v5 = vmul.f32 %v456_v4, %v445_v57  ;;  %v505_v30 = vsel %vm502_vm2, %v504_v35, %v500_v34 }
 0x340   :  { %v506_v39 = vmul.f32 %v505_v30, %v450_v37 }
 0x341   :  { %v459_v7 = vsel %vm458_vm6, %v445_v57, %v457_v5 }
 0x342   :  { %v462_v8 = vsel %vm460_vm7, %v461_v6, %v459_v7  ;;  %v2392_v40 = vadd.f32 %v2005_v33, %v506_v39 }
 0x343   :  { %v475_v10 = vadd.f32 1e-06, %v462_v8 }
 0x345   :  { %2055 = vrcp.f32 %v475_v10  ;;  %v488_v19 = vand.u32 2147483648, %v475_v10  ;;  %v486_v22 = vand.u32 2147483647, %v475_v10  ;;  %vm482_vm9 = vweird.f32 %v475_v10 }
 0x347   :  { %v489_v26 = vor.u32 1.1754944e-38, %v488_v19  ;;  %vm487_vm14 = vcmp.eq.f32.partialorder %v486_v22, 8.507059e+37 }
 0x34b   :  { %v2056_v13 = vpop.eup %2055 }
 0x34c   :  { %v478_v14 = vmul.f32 %v2056_v13, %v475_v10  ;;  %vm483_vm8 = vweird.f32 %v2056_v13 }
 0x34d   :  { %vm484_vm11 = vmor %vm482_vm9, %vm483_vm8 }
 0x34e   :  { %v479_v15 = vsub.f32 1.0, %v478_v14 }
 0x350   :  { %v480_v20 = vmul.f32 %v2056_v13, %v479_v15  ;;  %v2004_v15 = vld [vmem:[%s3160_s3 + $0x90] ss:$0 sm:$0xff] }
 0x351   :  { %v534_v30 = vmul.f32 %v2004_v15, %v2369_v49  ;;  %v2012_v49 = vld [vmem:[%s3160_s3 + $0x108] ss:$0 sm:$0xff] }
 0x352   :  { %v481_v23 = vadd.f32 %v2056_v13, %v480_v20 }
 0x354   :  { %v485_v28 = vsel %vm484_vm11, %v2056_v13, %v481_v23  ;;  %v533_v23 = vmul.f32 %v2004_v15, %v2357_v41 }
 0x355   :  { %v490_v31 = vsel %vm487_vm14, %v489_v26, %v485_v28 }
 0x356   :  { %v491_v32 = vmul.f32 %v490_v31, %v449_v25  ;;  %v2006_v25 = vld [vmem:[%s3160_s3 + $0x98] ss:$0 sm:$0xff] }
 0x358   :  { %v2387_v36 = vadd.f32 %v2005_v33, %v491_v32 }
 0x35a   :  { %1948 = vmatmul.msk.f32.vlgmr.msra.gmra.mxu3 %vm390_vm13, %v2387_v36 }
 0x362   :  { %1949 = vmatmul.msk.f32.gmra.mxu3 %vm390_vm13, %v2392_v40 }
 0x396   :  { %v525_v46 = vpop.xlane.xlu2 %524 }
 0x397   :  { %v529_v50 = vmul.f32 0.032258064, %v525_v46  ;;  %v2013_v46 = vld [vmem:[%s3160_s3 + $0x130] ss:$0 sm:$0xff] }
 0x399   :  { %2057 = vrsqrt.f32 %v529_v50  ;;  %vm542_vm3 = vcmp.eq.f32.partialorder %v529_v50, inf  ;;  %v545_v63 = vand.u32 2147483648, %v529_v50  ;;  %vm544_vm4 = vcmp.eq.f32.partialorder %v529_v50, 0.0 }
 0x39e   :  { %v528_v51 = vpop.xlane.xlu2 %527 }
 0x39f   :  { %v2058_v52 = vpop.eup %2057  ;;  %v530_v53 = vmul.f32 0.032258064, %v528_v51  ;;  %v2008_v51 = vld [vmem:[%s3160_s3 + $0x160] ss:$0 sm:$0xff] }
 0x3a0   :  { %v536_v54 = vmul.f32 %v2058_v52, %v529_v50 }
 0x3a1   :  { %2059 = vrsqrt.f32 %v530_v53  ;;  %vm554_vm5 = vcmp.eq.f32.partialorder %v530_v53, inf  ;;  %v557_v7 = vand.u32 2147483648, %v530_v53  ;;  %vm556_vm6 = vcmp.eq.f32.partialorder %v530_v53, 0.0 }
 0x3a2   :  { %v537_v55 = vmul.f32 %v2058_v52, %v536_v54 }
 0x3a4   :  { %v538_v56 = vmul.f32 0.5, %v537_v55 }
 0x3a6   :  { %v539_v57 = vsub.f32 1.5, %v538_v56 }
 0x3a7   :  { %v2060_v58 = vpop.eup %2059 }
 0x3a8   :  { %v540_v59 = vmul.f32 %v2058_v52, %v539_v57  ;;  %v548_v60 = vmul.f32 %v2060_v58, %v530_v53  ;;  %v2009_v52 = vld [vmem:[%s3160_s3 + $0x168] ss:$0 sm:$0xff] }
 0x3aa   :  { %v541_v61 = vmul.f32 %v540_v59, %v529_v50  ;;  %v549_v62 = vmul.f32 %v2060_v58, %v548_v60  ;;  %v2010_v59 = vld [vmem:[%s3160_s3 + $0x170] ss:$0 sm:$0xff] }
 0x3ac   :  { %v543_v0 = vsel %vm542_vm3, %v529_v50, %v541_v61  ;;  %v550_v1 = vmul.f32 0.5, %v549_v62  ;;  %v2007_v50 = vld [vmem:[%s3160_s3 + $0xe0] ss:$0 sm:$0xff]  ;;  %v2457_v61 = vld [vmem:[%s3160_s3 + $0x178] ss:$0 sm:$0xff] }
 0x3ad   :  { %v546_v2 = vsel %vm544_vm4, %v545_v63, %v543_v0 }
 0x3ae   :  { %v559_v3 = vadd.f32 1e-06, %v546_v2  ;;  %v551_v4 = vsub.f32 1.5, %v550_v1 }
 0x3b0   :  { %2061 = vrcp.f32 %v559_v3  ;;  %v552_v5 = vmul.f32 %v2060_v58, %v551_v4  ;;  %v572_v14 = vand.u32 2147483648, %v559_v3  ;;  %v570_v17 = vand.u32 2147483647, %v559_v3 }
 0x3b1   :  { %vm566_vm8 = vweird.f32 %v559_v3 }
 0x3b2   :  { %v553_v6 = vmul.f32 %v552_v5, %v530_v53  ;;  %v573_v22 = vor.u32 1.1754944e-38, %v572_v14  ;;  %vm571_vm10 = vcmp.eq.f32.partialorder %v570_v17, 8.507059e+37 }
 0x3b4   :  { %v555_v8 = vsel %vm554_vm5, %v530_v53, %v553_v6 }
 0x3b5   :  { %v558_v9 = vsel %vm556_vm6, %v557_v7, %v555_v8 }
 0x3b6   :  { %v2062_v10 = vpop.eup %2061  ;;  %v560_v11 = vadd.f32 1e-06, %v558_v9 }
 0x3b7   :  { %v562_v12 = vmul.f32 %v2062_v10, %v559_v3  ;;  %vm567_vm7 = vweird.f32 %v2062_v10 }
 0x3b8   :  { %2063 = vrcp.f32 %v560_v11  ;;  %vm568_vm9 = vmor %vm566_vm8, %vm567_vm7  ;;  %v587_v31 = vand.u32 2147483648, %v560_v11  ;;  %v585_v34 = vand.u32 2147483647, %v560_v11  ;;  %vm581_vm14 = vweird.f32 %v560_v11 }
 0x3b9   :  { %v563_v13 = vsub.f32 1.0, %v562_v12 }
 0x3ba   :  { %v588_v35 = vor.u32 1.1754944e-38, %v587_v31  ;;  %vm586_vm0 = vcmp.eq.f32.partialorder %v585_v34, 8.507059e+37 }
 0x3bb   :  { %v564_v16 = vmul.f32 %v2062_v10, %v563_v13 }
 0x3bd   :  { %v565_v19 = vadd.f32 %v2062_v10, %v564_v16  ;;  %v2491_v16 = vld [vmem:[%s3159_s2 + $0x18] sm:$0xff] }
 0x3be   :  { %v2064_v20 = vpop.eup %2063 }
 0x3bf   :  { %v569_v24 = vsel %vm568_vm9, %v2062_v10, %v565_v19  ;;  %v577_v26 = vmul.f32 %v2064_v20, %v560_v11  ;;  %vm582_vm11 = vweird.f32 %v2064_v20  ;;  %v2484_v11 = vld [vmem:[%s3159_s2 + $0x10] sm:$0xff] }
 0x3c0   :  { %v574_v27 = vsel %vm571_vm10, %v573_v22, %v569_v24  ;;  %vm583_vm15 = vmor %vm581_vm14, %vm582_vm11 }
 0x3c1   :  { %v575_v28 = vmul.f32 %v574_v27, %v533_v23  ;;  %v578_v29 = vsub.f32 1.0, %v577_v26 }
 0x3c3   :  { %v593_v32 = vadd.f32 %v2006_v25, %v575_v28  ;;  %v579_v33 = vmul.f32 %v2064_v20, %v578_v29 }
 0x3c5   :  { %1950 = vmatmul.msk.f32.vlgmr.msra.gmra.mxu2 %vm390_vm13, %v593_v32  ;;  %1952 = vmatmul.msk.f32.vlgmr.msrb.gmra.mxu3 %vm390_vm13, %v593_v32  ;;  %v580_v41 = vadd.f32 %v2064_v20, %v579_v33 }
 0x3c7   :  { %v584_v37 = vsel %vm583_vm15, %v2064_v20, %v580_v41 }
 0x3c8   :  { %v589_v39 = vsel %vm586_vm0, %v588_v35, %v584_v37 }
 0x3c9   :  { %v590_v38 = vmul.f32 %v589_v39, %v534_v30 }
 0x3cb   :  { %v594_v42 = vadd.f32 %v2006_v25, %v590_v38 }
 0x3cd   :  { %1951 = vmatmul.msk.f32.gmra.mxu2 %vm390_vm13, %v594_v42  ;;  %1953 = vmatmul.msk.f32.gmra.mxu3 %vm390_vm13, %v594_v42 }
 0x3dd   :  { %v624_v21 = vpop.f32.mrf.mxu3 }
 0x3de   :  { %v2449_v58 = vadd.f32 %v2007_v50, %v624_v21 }
 0x3e0   :  { %v698_v2 = vmul.f32 %v2008_v51, %v2449_v58  ;;  %v787_v3 = vmul.f32 %v2009_v52, %v2449_v58  ;;  %v928_v9 = vmul.f32 %v2010_v59, %v2449_v58 }
 0x3e5   :  { %v627_v43 = vpop.f32.mrf.mxu3 }
 0x3e6   :  { %v2469_v6 = vadd.f32 %v2007_v50, %v627_v43 }
 0x3e8   :  { %v699_v7 = vmul.f32 %v2008_v51, %v2469_v6  ;;  %v788_v8 = vmul.f32 %v2009_v52, %v2469_v6  ;;  %v929_v10 = vmul.f32 %v2010_v59, %v2469_v6 }
 0x448   :  { %v659_v44 = vpop.f32.mrf.mxu2  ;;  %v688_v45 = vpop.f32.mrf.mxu3 }
 0x449   :  { %v689_v55 = vadd.f32 %v2013_v46, %v688_v45  ;;  %v660_v60 = vadd.f32 %v2012_v49, %v659_v44 }
 0x44b   :  { %v866_v62 = vmul.f32 %v2009_v52, %v689_v55  ;;  %v783_v63 = vmul.f32 %v2008_v51, %v689_v55  ;;  %v1007_v4 = vmul.f32 %v2010_v59, %v689_v55  ;;  %v1121_v5 = vmul.f32 %v2457_v61, %v689_v55 }
 0x450   :  { %v662_v47 = vpop.f32.mrf.mxu2  ;;  %v691_v48 = vpop.f32.mrf.mxu3 }
 0x451   :  { %v663_v53 = vadd.f32 %v2012_v49, %v662_v47  ;;  %v692_v54 = vadd.f32 %v2013_v46, %v691_v48 }
 0x453   :  { %1954 = vmatpush.xpose.msk.msra.mxu0 %vm390_vm13, %v663_v53  ;;  %1958 = vmatpush.xpose.msk.msra.mxu1 %vm390_vm13, %v663_v53  ;;  %v867_v56 = vmul.f32 %v2009_v52, %v692_v54  ;;  %v784_v57 = vmul.f32 %v2008_v51, %v692_v54  ;;  %v1008_v0 = vmul.f32 %v2010_v59, %v692_v54 }
 0x454   :  { %v1122_v1 = vmul.f32 %v2457_v61, %v692_v54 }
 0x455   :  { %888 = vmatpush.msrb.mxu2 %v867_v56  ;;  %917 = vmatpush.msra.mxu3 %v784_v57 }
 0x457   :  { %1955 = vmatpush.xpose.msk.msra.mxu0 %vm390_vm13, %v660_v60  ;;  %1959 = vmatpush.xpose.msk.msra.mxu1 %vm390_vm13, %v660_v60 }
 0x458   :  { %889 = vmatpush.msrb.mxu2 %v866_v62  ;;  %918 = vmatpush.msra.mxu3 %v783_v63 }
 0x45a   :  { %1972 = vmatpush.xpose.msk.msra.mxu2 %vm390_vm13, %v663_v53  ;;  %1143 = vmatpush.msrb.mxu3 %v1122_v1 }
 0x45b   :  { %1966 = vmatpush.xpose.msk.msrb.mxu0 %vm390_vm13, %v663_v53  ;;  %1029 = vmatpush.msrb.mxu1 %v1008_v0 }
 0x45c   :  { %1956 = vmatmul.msk.f32.vlgmr.msra.gmra.mxu0 %vm390_vm13, %v698_v2  ;;  %1960 = vmatmul.msk.f32.vlgmr.msra.gmra.mxu1 %vm390_vm13, %v787_v3 }
 0x45d   :  { %1030 = vmatpush.msrb.mxu1 %v1007_v4  ;;  %1144 = vmatpush.msrb.mxu3 %v1121_v5 }
 0x45e   :  { %1973 = vmatpush.xpose.msk.msra.mxu2 %vm390_vm13, %v660_v60 }
 0x45f   :  { %1967 = vmatpush.xpose.msk.msrb.mxu0 %vm390_vm13, %v660_v60 }
 0x464   :  { %1957 = vmatmul.msk.f32.gmra.mxu0 %vm390_vm13, %v699_v7  ;;  %1961 = vmatmul.msk.f32.gmra.mxu1 %vm390_vm13, %v788_v8 }
 0x46c   :  { %1968 = vmatmul.msk.f32.vlgmr.msrb.gmra.mxu0 %vm390_vm13, %v928_v9 }
 0x474   :  { %1969 = vmatmul.msk.f32.gmra.mxu0 %vm390_vm13, %v929_v10 }
 0x4d9   :  { %v729_v12 = vpop.f32.mrf.mxu0  ;;  %v812_v13 = vpop.f32.mrf.mxu1 }
 0x4da   :  { %v813_v14 = vadd.f32 %v812_v13, %v2484_v11  ;;  %v730_v23 = vadd.f32 %v729_v12, %v2484_v11 }
 0x4dc   :  { %v818_v15 = vsel %vm322_vm12, %v813_v14, -inf  ;;  %v735_v24 = vsel %vm322_vm12, %v730_v23, -inf }
 0x4dd   :  { %819 = vmax.xlane.f32.xlu2 %v818_v15 }
 0x4e1   :  { %v815_v17 = vpop.f32.mrf.mxu1  ;;  %v732_v20 = vpop.f32.mrf.mxu0 }
 0x4e2   :  { %v816_v19 = vadd.f32 %v815_v17, %v2491_v16  ;;  %v2501_v30 = vadd.f32 %v732_v20, %v2491_v16 }
 0x4e4   :  { %v821_v22 = vsel %vm322_vm12, %v816_v19, -inf  ;;  %v738_v43 = vsel %vm322_vm12, %v2501_v30, -inf }
 0x4e5   :  { %822 = vmax.xlane.f32.xlu0 %v821_v22 }
 0x4e9   :  { %v953_v25 = vpop.f32.mrf.mxu0 }
 0x4ea   :  { %v954_v26 = vadd.f32 %v953_v25, %v2484_v11 }
 0x4ec   :  { %v959_v27 = vsel %vm322_vm12, %v954_v26, -inf }
 0x4ed   :  { %736 = vmax.xlane.f32.xlu0 %v735_v24 }
 0x4f5   :  { %960 = vmax.xlane.f32.xlu0 %v959_v27 }
 0x550   :  { %v820_v28 = vpop.xlane.xlu2 %819 }
 0x551   :  { %v824_v29 = vsub.f32 %v813_v14, %v820_v28 }
 0x553   :  { %v826_v31 = vmul.f32 1.442695, %v824_v29 }
 0x555   :  { %2065 = vpow2.f32 %v826_v31 }
 0x558   :  { %v823_v32 = vpop.xlane.xlu0 %822 }
 0x559   :  { %v825_v33 = vsub.f32 %v816_v19, %v823_v32 }
 0x55b   :  { %v2066_v34 = vpop.eup %2065  ;;  %v828_v41 = vmul.f32 1.442695, %v825_v33 }
 0x55c   :  { %v830_v35 = vsel %vm322_vm12, %v2066_v34, 0.0 }
 0x55d   :  { %2067 = vpow2.f32 %v828_v41  ;;  %831 = vadd.xlane.f32.xlu1 %v830_v35  ;;  %v1042_v41 = vmul.f32 %v2457_v61, %v2449_v58  ;;  %v1043_v58 = vmul.f32 %v2457_v61, %v2469_v6 }
 0x560   :  { %v737_v37 = vpop.xlane.xlu0 %736 }
 0x561   :  { %v741_v39 = vsub.f32 %v730_v23, %v737_v37 }
 0x563   :  { %v2068_v38 = vpop.eup %2067  ;;  %v743_v42 = vmul.f32 1.442695, %v741_v39 }
 0x564   :  { %v833_v21 = vsel %vm322_vm12, %v2068_v38, 0.0 }
 0x565   :  { %2069 = vpow2.f32 %v743_v42  ;;  %834 = vadd.xlane.f32.xlu2 %v833_v21  ;;  %739 = vmax.xlane.f32.xlu1 %v738_v43 }
 0x568   :  { %v961_v44 = vpop.xlane.xlu0 %960 }
 0x569   :  { %v965_v45 = vsub.f32 %v954_v26, %v961_v44 }
 0x56b   :  { %v2506_v46 = vpop.eup %2069  ;;  %v967_v49 = vmul.f32 1.442695, %v965_v45 }
 0x56c   :  { %v747_v47 = vsel %vm322_vm12, %v2506_v46, 0.0 }
 0x56d   :  { %2071 = vpow2.f32 %v967_v49  ;;  %748 = vadd.xlane.f32.xlu0 %v747_v47 }
 0x573   :  { %v2510_v48 = vpop.eup %2071 }
 0x574   :  { %v971_v50 = vsel %vm322_vm12, %v2510_v48, 0.0 }
 0x575   :  { %972 = vadd.xlane.f32.xlu0 %v971_v50 }
 0x5d0   :  { %v832_v51 = vpop.xlane.xlu1 %831 }
 0x5d1   :  { %2073 = vrcp.f32 %v832_v51  ;;  %v847_v56 = vand.u32 2147483648, %v832_v51  ;;  %v845_v59 = vand.u32 2147483647, %v832_v51  ;;  %vm841_vm3 = vweird.f32 %v832_v51 }
 0x5d3   :  { %v848_v63 = vor.u32 1.1754944e-38, %v847_v56  ;;  %vm846_vm5 = vcmp.eq.f32.partialorder %v845_v59, 8.507059e+37 }
 0x5d7   :  { %v2074_v52 = vpop.eup %2073 }
 0x5d8   :  { %v837_v53 = vmul.f32 %v2074_v52, %v832_v51  ;;  %v835_v54 = vpop.xlane.xlu2 %834  ;;  %vm842_vm2 = vweird.f32 %v2074_v52  ;;  %v740_v49 = vpop.xlane.xlu1 %739 }
 0x5d9   :  { %2075 = vrcp.f32 %v835_v54  ;;  %vm843_vm4 = vmor %vm841_vm3, %vm842_vm2  ;;  %v862_v8 = vand.u32 2147483648, %v835_v54  ;;  %v860_v9 = vand.u32 2147483647, %v835_v54  ;;  %vm856_vm7 = vweird.f32 %v835_v54 }
 0x5da   :  { %v838_v55 = vsub.f32 1.0, %v837_v53  ;;  %v742_v51 = vsub.f32 %v2501_v30, %v740_v49 }
 0x5db   :  { %v863_v13 = vor.u32 1.1754944e-38, %v862_v8  ;;  %vm861_vm9 = vcmp.eq.f32.partialorder %v860_v9, 8.507059e+37 }
 0x5dc   :  { %v839_v57 = vmul.f32 %v2074_v52, %v838_v55  ;;  %v745_v53 = vmul.f32 1.442695, %v742_v51 }
 0x5de   :  { %v840_v60 = vadd.f32 %v2074_v52, %v839_v57 }
 0x5df   :  { %v2076_v62 = vpop.eup %2075 }
 0x5e0   :  { %v844_v0 = vsel %vm843_vm4, %v2074_v52, %v840_v60  ;;  %v852_v1 = vmul.f32 %v2076_v62, %v835_v54  ;;  %v749_v2 = vpop.xlane.xlu0 %748  ;;  %vm857_vm6 = vweird.f32 %v2076_v62 }
 0x5e1   :  { %v849_v3 = vsel %vm846_vm5, %v848_v63, %v844_v0  ;;  %2077 = vrcp.f32 %v749_v2  ;;  %vm858_vm8 = vmor %vm856_vm7, %vm857_vm6  ;;  %v764_v22 = vand.u32 2147483648, %v749_v2  ;;  %v762_v25 = vand.u32 2147483647, %v749_v2 }
 0x5e2   :  { %v853_v4 = vsub.f32 1.0, %v852_v1  ;;  %v850_v5 = vmul.f32 %v2066_v34, %v849_v3  ;;  %vm758_vm11 = vweird.f32 %v749_v2 }
 0x5e3   :  { %v765_v28 = vor.u32 1.1754944e-38, %v764_v22  ;;  %vm763_vm15 = vcmp.eq.f32.partialorder %v762_v25, 8.507059e+37 }
 0x5e4   :  { %v854_v7 = vmul.f32 %v2076_v62, %v853_v4  ;;  %1962 = vmatmul.msk.f32.vlgmr.msrb.gmra.mxu2 %vm322_vm12, %v850_v5 }
 0x5e6   :  { %v855_v10 = vadd.f32 %v2076_v62, %v854_v7 }
 0x5e7   :  { %v2078_v12 = vpop.eup %2077 }
 0x5e8   :  { %v754_v14 = vmul.f32 %v2078_v12, %v749_v2  ;;  %v973_v15 = vpop.xlane.xlu0 %972  ;;  %v859_v17 = vsel %vm858_vm8, %v2076_v62, %v855_v10  ;;  %vm759_vm10 = vweird.f32 %v2078_v12 }
 0x5e9   :  { %2079 = vrcp.f32 %v973_v15  ;;  %v864_v20 = vsel %vm861_vm9, %v863_v13, %v859_v17  ;;  %vm760_vm14 = vmor %vm758_vm11, %vm759_vm10  ;;  %v988_v35 = vand.u32 2147483648, %v973_v15  ;;  %v986_v39 = vand.u32 2147483647, %v973_v15 }
 0x5ea   :  { %v755_v19 = vsub.f32 1.0, %v754_v14  ;;  %v865_v23 = vmul.f32 %v2068_v38, %v864_v20  ;;  %vm982_vm2 = vweird.f32 %v973_v15  ;;  %2081 = vpow2.f32 %v745_v53 }
 0x5eb   :  { %v989_v42 = vor.u32 1.1754944e-38, %v988_v35  ;;  %vm987_vm4 = vcmp.eq.f32.partialorder %v986_v39, 8.507059e+37 }
 0x5ec   :  { %v756_v24 = vmul.f32 %v2078_v12, %v755_v19  ;;  %1963 = vmatmul.msk.f32.gmra.mxu2 %vm322_vm12, %v865_v23 }
 0x5ee   :  { %v757_v26 = vadd.f32 %v2078_v12, %v756_v24 }
 0x5ef   :  { %v2080_v27 = vpop.eup %2079 }
 0x5f0   :  { %v761_v29 = vsel %vm760_vm14, %v2078_v12, %v757_v26  ;;  %v978_v31 = vmul.f32 %v2080_v27, %v973_v15  ;;  %vm983_vm0 = vweird.f32 %v2080_v27 }
 0x5f1   :  { %v766_v32 = vsel %vm763_vm15, %v765_v28, %v761_v29  ;;  %vm984_vm3 = vmor %vm982_vm2, %vm983_vm0 }
 0x5f2   :  { %v979_v33 = vsub.f32 1.0, %v978_v31  ;;  %v767_v34 = vmul.f32 %v2506_v46, %v766_v32  ;;  %v1157_v31 = vld [vmem:[%s3160_s3 + $0x150] sm:$0xff]  ;;  %v1156_v32 = vld [vmem:[%s3160_s3 + $0x148] sm:$0xff] }
 0x5f3   :  { %1176 = vmatpush.msra.mxu0 %v1157_v31 }
 0x5f4   :  { %v980_v37 = vmul.f32 %v2080_v27, %v979_v33  ;;  %1964 = vmatmul.msk.f32.vlgmr.msra.gmra.mxu3 %vm322_vm12, %v767_v34  ;;  %1974 = vmatmul.msk.f32.vlgmr.msra.gmra.mxu2 %vm390_vm13, %v1042_v41 }
 0x5f5   :  { %1177 = vmatpush.msra.mxu0 %v1156_v32 }
 0x5f6   :  { %v981_v38 = vadd.f32 %v2080_v27, %v980_v37 }
 0x5f8   :  { %v985_v21 = vsel %vm984_vm3, %v2080_v27, %v981_v38 }
 0x5f9   :  { %v990_v43 = vsel %vm987_vm4, %v989_v42, %v985_v21 }
 0x5fa   :  { %v991_v44 = vmul.f32 %v2510_v48, %v990_v43  ;;  %v956_v48 = vpop.f32.mrf.mxu0 }
 0x5fb   :  { %v957_v61 = vadd.f32 %v956_v48, %v2491_v16 }
 0x5fc   :  { %1970 = vmatmul.msk.f32.vlgmr.msrb.gmra.mxu1 %vm322_vm12, %v991_v44  ;;  %1975 = vmatmul.msk.f32.gmra.mxu2 %vm390_vm13, %v1043_v58 }
 0x5fd   :  { %v962_v56 = vsel %vm322_vm12, %v957_v61, -inf }
 0x667   :  { %v2526_v45 = vpop.f32.mrf.mxu2 }
 0x66f   :  { %v2528_v46 = vpop.f32.mrf.mxu2 }
 0x677   :  { %v1067_v47 = vpop.f32.mrf.mxu2 }
 0x678   :  { %v1068_v50 = vadd.f32 %v1067_v47, %v2484_v11  ;;  %v2082_v11 = vpop.eup %2081 }
 0x679   :  { %v750_v30 = vsel %vm322_vm12, %v2082_v11, 0.0 }
 0x67a   :  { %v1073_v52 = vsel %vm322_vm12, %v1068_v50, -inf }
 0x67b   :  { %1074 = vmax.xlane.f32.xlu2 %v1073_v52 }
 0x67f   :  { %v1070_v6 = vpop.f32.mrf.mxu2 }
 0x680   :  { %v1071_v54 = vadd.f32 %v1070_v6, %v2491_v16 }
 0x682   :  { %v1076_v55 = vsel %vm322_vm12, %v1071_v54, -inf }
 0x683   :  { %1077 = vmax.xlane.f32.xlu1 %v1076_v55  ;;  %963 = vmax.xlane.f32.xlu2 %v962_v56 }
 0x68b   :  { %751 = vadd.xlane.f32.xlu1 %v750_v30 }
 0x6ee   :  { %v1075_v57 = vpop.xlane.xlu2 %1074 }
 0x6ef   :  { %v1079_v59 = vsub.f32 %v1068_v50, %v1075_v57 }
 0x6f1   :  { %v1081_v60 = vmul.f32 1.442695, %v1079_v59 }
 0x6f3   :  { %2083 = vpow2.f32 %v1081_v60 }
 0x6f6   :  { %v964_v62 = vpop.xlane.xlu2 %963  ;;  %v1078_v63 = vpop.xlane.xlu1 %1077 }
 0x6f7   :  { %v966_v0 = vsub.f32 %v957_v61, %v964_v62  ;;  %v1080_v1 = vsub.f32 %v1071_v54, %v1078_v63 }
 0x6f9   :  { %v2084_v16 = vpop.eup %2083  ;;  %v969_v2 = vmul.f32 1.442695, %v966_v0  ;;  %v1083_v3 = vmul.f32 1.442695, %v1080_v1  ;;  %v1155_v1 = vld [vmem:[%s3160_s3 + $0x140] sm:$0xff] }
 0x6fa   :  { %v1085_v4 = vsel %vm322_vm12, %v2084_v16, 0.0  ;;  %1178 = vmatpush.msra.mxu0 %v1155_v1  ;;  %v2015_v1 = vld [vmem:[%s3160_s3 + $0xa0] ss:$0 sm:$0xff] }
 0x6fb   :  { %2085 = vpow2.f32 %v969_v2  ;;  %1086 = vadd.xlane.f32.xlu2 %v1085_v4  ;;  %v920_v2 = vpop.f32.mrf.mxu3 }
 0x6fc   :  { %2087 = vpow2.f32 %v1083_v3  ;;  %v921_v4 = vadd.f32 %v920_v2, %v2526_v45 }
 0x6fe   :  { %v752_v5 = vpop.xlane.xlu1 %751 }
 0x6ff   :  { %2089 = vrcp.f32 %v752_v5  ;;  %v779_v15 = vand.u32 2147483648, %v752_v5  ;;  %v777_v19 = vand.u32 2147483647, %v752_v5  ;;  %vm773_vm6 = vweird.f32 %v752_v5 }
 0x701   :  { %v2539_v7 = vpop.eup %2085  ;;  %v780_v22 = vor.u32 1.1754944e-38, %v779_v15  ;;  %vm778_vm8 = vcmp.eq.f32.partialorder %v777_v19, 8.507059e+37 }
 0x702   :  { %v2541_v8 = vpop.eup %2087  ;;  %v974_v9 = vsel %vm322_vm12, %v2539_v7, 0.0 }
 0x703   :  { %975 = vadd.xlane.f32.xlu2 %v974_v9  ;;  %v1088_v10 = vsel %vm322_vm12, %v2541_v8, 0.0 }
 0x704   :  { %1089 = vadd.xlane.f32.xlu1 %v1088_v10 }
 0x705   :  { %v2090_v12 = vpop.eup %2089 }
 0x706   :  { %v769_v13 = vmul.f32 %v2090_v12, %v752_v5  ;;  %vm774_vm5 = vweird.f32 %v2090_v12  ;;  %v1032_v5 = vpop.f32.mrf.mxu1 }
 0x707   :  { %vm775_vm7 = vmor %vm773_vm6, %vm774_vm5 }
 0x708   :  { %v770_v14 = vsub.f32 1.0, %v769_v13 }
 0x70a   :  { %v771_v17 = vmul.f32 %v2090_v12, %v770_v14 }
 0x70c   :  { %v772_v20 = vadd.f32 %v2090_v12, %v771_v17  ;;  %v2014_v17 = vld [vmem:[%s3160_s3 + $0x158] ss:$0 sm:$0xff] }
 0x70e   :  { %v776_v23 = vsel %vm775_vm7, %v2090_v12, %v772_v20 }
 0x70f   :  { %v781_v24 = vsel %vm778_vm8, %v780_v22, %v776_v23 }
 0x710   :  { %v782_v25 = vmul.f32 %v2082_v11, %v781_v24 }
 0x712   :  { %1965 = vmatmul.msk.f32.gmra.mxu3 %vm322_vm12, %v782_v25 }
 0x76e   :  { %v1087_v26 = vpop.xlane.xlu2 %1086 }
 0x76f   :  { %2091 = vrcp.f32 %v1087_v26  ;;  %v1102_v41 = vand.u32 2147483648, %v1087_v26  ;;  %v1100_v37 = vand.u32 2147483647, %v1087_v26  ;;  %vm1096_vm10 = vweird.f32 %v1087_v26 }
 0x771   :  { %v1103_v42 = vor.u32 1.1754944e-38, %v1102_v41  ;;  %vm1101_vm14 = vcmp.eq.f32.partialorder %v1100_v37, 8.507059e+37 }
 0x775   :  { %v2092_v27 = vpop.eup %2091 }
 0x776   :  { %v1092_v28 = vmul.f32 %v2092_v27, %v1087_v26  ;;  %v976_v29 = vpop.xlane.xlu2 %975  ;;  %vm1097_vm9 = vweird.f32 %v2092_v27 }
 0x777   :  { %2093 = vrcp.f32 %v976_v29  ;;  %v1090_v33 = vpop.xlane.xlu1 %1089  ;;  %vm1098_vm11 = vmor %vm1096_vm10, %vm1097_vm9  ;;  %v1003_v51 = vand.u32 2147483648, %v976_v29  ;;  %v1001_v61 = vand.u32 2147483647, %v976_v29  ;;  %vm997_vm2 = vweird.f32 %v976_v29 }
 0x778   :  { %v1093_v34 = vsub.f32 1.0, %v1092_v28  ;;  %2095 = vrcp.f32 %v1090_v33  ;;  %v1117_v53 = vand.u32 2147483648, %v1090_v33  ;;  %v1115_v54 = vand.u32 2147483647, %v1090_v33 }
 0x779   :  { %v1004_v56 = vor.u32 1.1754944e-38, %v1003_v51  ;;  %vm1111_vm3 = vweird.f32 %v1090_v33  ;;  %vm1002_vm5 = vcmp.eq.f32.partialorder %v1001_v61, 8.507059e+37 }
 0x77a   :  { %v1094_v35 = vmul.f32 %v2092_v27, %v1093_v34  ;;  %v1118_v30 = vor.u32 1.1754944e-38, %v1117_v53  ;;  %vm1116_vm7 = vcmp.eq.f32.partialorder %v1115_v54, 8.507059e+37 }
 0x77c   :  { %v1095_v39 = vadd.f32 %v2092_v27, %v1094_v35 }
 0x77d   :  { %v2094_v38 = vpop.eup %2093 }
 0x77e   :  { %v2096_v21 = vpop.eup %2095  ;;  %v1099_v43 = vsel %vm1098_vm11, %v2092_v27, %v1095_v39  ;;  %v993_v44 = vmul.f32 %v2094_v38, %v976_v29  ;;  %vm998_vm15 = vweird.f32 %v2094_v38 }
 0x77f   :  { %v1104_v58 = vsel %vm1101_vm14, %v1103_v42, %v1099_v43  ;;  %v1107_v49 = vmul.f32 %v2096_v21, %v1090_v33  ;;  %vm1112_vm0 = vweird.f32 %v2096_v21  ;;  %vm999_vm4 = vmor %vm997_vm2, %vm998_vm15 }
 0x780   :  { %v994_v47 = vsub.f32 1.0, %v993_v44  ;;  %v1105_v50 = vmul.f32 %v2084_v16, %v1104_v58  ;;  %vm1113_vm6 = vmor %vm1111_vm3, %vm1112_vm0  ;;  %v1154_v16 = vld [vmem:[%s3160_s3 + $0x138] sm:$0xff] }
 0x781   :  { %v1108_v52 = vsub.f32 1.0, %v1107_v49  ;;  %1179 = vmatpush.msra.mxu0 %v1154_v16 }
 0x782   :  { %v995_v48 = vmul.f32 %v2094_v38, %v994_v47  ;;  %1976 = vmatmul.msk.f32.vlgmr.msrb.gmra.mxu3 %vm322_vm12, %v1105_v50 }
 0x783   :  { %v1109_v6 = vmul.f32 %v2096_v21, %v1108_v52 }
 0x784   :  { %v996_v55 = vadd.f32 %v2094_v38, %v995_v48 }
 0x785   :  { %v1110_v11 = vadd.f32 %v2096_v21, %v1109_v6 }
 0x786   :  { %v1000_v57 = vsel %vm999_vm4, %v2094_v38, %v996_v55 }
 0x787   :  { %v1005_v59 = vsel %vm1002_vm5, %v1004_v56, %v1000_v57  ;;  %v1114_v60 = vsel %vm1113_vm6, %v2096_v21, %v1110_v11 }
 0x788   :  { %v1006_v62 = vmul.f32 %v2539_v7, %v1005_v59  ;;  %v1119_v63 = vsel %vm1116_vm7, %v1118_v30, %v1114_v60  ;;  %v1038_v7 = vadd.f32 %v1032_v5, %v921_v4 }
 0x789   :  { %v1120_v0 = vmul.f32 %v2541_v8, %v1119_v63 }
 0x78a   :  { %1971 = vmatmul.msk.f32.gmra.mxu1 %vm322_vm12, %v1006_v62 }
 0x78b   :  { %1977 = vmatmul.msk.f32.gmra.mxu3 %vm322_vm12, %v1120_v0 }
 0x795   :  { %v923_v3 = vpop.f32.mrf.mxu3 }
 0x796   :  { %v924_v12 = vadd.f32 %v923_v3, %v2528_v46 }
 0x805   :  { %v1146_v8 = vpop.f32.mrf.mxu3 }
 0x806   :  { %v1152_v9 = vadd.f32 %v1146_v8, %v1038_v7 }
 0x807   :  { %v1035_v10 = vpop.f32.mrf.mxu1 }
 0x808   :  { %1978 = vmatmul.msk.f32.vlgmr.msra.gmra.mxu0 %vm390_vm13, %v1152_v9  ;;  %v1039_v13 = vadd.f32 %v1035_v10, %v924_v12  ;;  %v2016_v9 = vld [vmem:[%s3160_s3 + $0xa8] ss:$0 sm:$0xff] }
 0x80e   :  { %v1149_v14 = vpop.f32.mrf.mxu3 }
 0x80f   :  { %v1153_v15 = vadd.f32 %v1149_v14, %v1039_v13 }
 0x811   :  { %1979 = vmatmul.msk.f32.gmra.mxu0 %vm390_vm13, %v1153_v15 }
 0x885   :  { %v1181_v19 = vpop.f32.mrf.mxu0 }
 0x886   :  { %v1187_v45 = vadd.f32 %v1181_v19, %v2387_v36 }
 0x888   :  { %v1191_v20 = vadd.f32 %v2014_v17, %v1187_v45 }
 0x88a   :  { %v1193_v22 = vsel %vm390_vm13, %v1191_v20, 0.0 }
 0x88b   :  { %1194 = vadd.xlane.f32.xlu0 %v1193_v22 }
 0x88e   :  { %v1184_v23 = vpop.f32.mrf.mxu0 }
 0x88f   :  { %v1188_v24 = vadd.f32 %v1184_v23, %v2392_v40 }
 0x891   :  { %v1192_v46 = vadd.f32 %v2014_v17, %v1188_v24 }
 0x893   :  { %v1196_v25 = vsel %vm390_vm13, %v1192_v46, 0.0 }
 0x894   :  { %1197 = vadd.xlane.f32.xlu1 %v1196_v25 }
 0x8fe   :  { %v1195_v26 = vpop.xlane.xlu0 %1194 }
 0x8ff   :  { %v1199_v27 = vmul.f32 %v1195_v26, %v2337_v18 }
 0x901   :  { %v1201_v28 = vsub.f32 %v1191_v20, %v1199_v27 }
 0x903   :  { %v1203_v29 = vmul.f32 %v1201_v28, %v1201_v28  ;;  %v1215_v7 = vmul.f32 %v2015_v1, %v1201_v28 }
 0x905   :  { %v1205_v31 = vsel %vm390_vm13, %v1203_v29, 0.0 }
 0x906   :  { %1206 = vadd.xlane.f32.xlu2 %v1205_v31 }
 0x907   :  { %v1198_v36 = vpop.xlane.xlu1 %1197 }
 0x908   :  { %v1200_v32 = vmul.f32 %v1198_v36, %v2337_v18 }
 0x90a   :  { %v2579_v33 = vsub.f32 %v1192_v46, %v1200_v32 }
 0x90c   :  { %v1204_v40 = vmul.f32 %v2579_v33, %v2579_v33  ;;  %v1216_v24 = vmul.f32 %v2015_v1, %v2579_v33 }
 0x90e   :  { %v1208_v34 = vsel %vm390_vm13, %v1204_v40, 0.0 }
 0x90f   :  { %1209 = vadd.xlane.f32.xlu0 %v1208_v34 }
 0x979   :  { %v1207_v41 = vpop.xlane.xlu2 %1206 }
 0x97a   :  { %v1211_v35 = vmul.f32 0.032258064, %v1207_v41 }
 0x97c   :  { %2097 = vrsqrt.f32 %v1211_v35  ;;  %vm1224_vm8 = vcmp.eq.f32.partialorder %v1211_v35, inf  ;;  %v1227_v51 = vand.u32 2147483648, %v1211_v35  ;;  %vm1226_vm9 = vcmp.eq.f32.partialorder %v1211_v35, 0.0 }
 0x982   :  { %v2098_v37 = vpop.eup %2097  ;;  %v1210_v39 = vpop.xlane.xlu0 %1209 }
 0x983   :  { %v1218_v38 = vmul.f32 %v2098_v37, %v1211_v35  ;;  %v1212_v42 = vmul.f32 0.032258064, %v1210_v39 }
 0x985   :  { %v1219_v21 = vmul.f32 %v2098_v37, %v1218_v38  ;;  %2099 = vrsqrt.f32 %v1212_v42  ;;  %vm1236_vm10 = vcmp.eq.f32.partialorder %v1212_v42, inf  ;;  %v1239_v11 = vand.u32 2147483648, %v1212_v42 }
 0x986   :  { %vm1238_vm11 = vcmp.eq.f32.partialorder %v1212_v42, 0.0 }
 0x987   :  { %v1220_v43 = vmul.f32 0.5, %v1219_v21 }
 0x989   :  { %v1221_v44 = vsub.f32 1.5, %v1220_v43 }
 0x98b   :  { %v2100_v58 = vpop.eup %2099  ;;  %v1222_v49 = vmul.f32 %v2098_v37, %v1221_v44 }
 0x98c   :  { %v1230_v47 = vmul.f32 %v2100_v58, %v1212_v42 }
 0x98d   :  { %v1223_v50 = vmul.f32 %v1222_v49, %v1211_v35 }
 0x98e   :  { %v1231_v52 = vmul.f32 %v2100_v58, %v1230_v47 }
 0x98f   :  { %v1225_v48 = vsel %vm1224_vm8, %v1211_v35, %v1223_v50 }
 0x990   :  { %v1232_v53 = vmul.f32 0.5, %v1231_v52  ;;  %v1228_v61 = vsel %vm1226_vm9, %v1227_v51, %v1225_v48 }
 0x991   :  { %v1241_v6 = vadd.f32 1e-06, %v1228_v61 }
 0x992   :  { %v1233_v54 = vsub.f32 1.5, %v1232_v53 }
 0x993   :  { %2101 = vrcp.f32 %v1241_v6  ;;  %v1254_v0 = vand.u32 2147483648, %v1241_v6  ;;  %v1252_v2 = vand.u32 2147483647, %v1241_v6  ;;  %vm1248_vm15 = vweird.f32 %v1241_v6 }
 0x994   :  { %v1234_v55 = vmul.f32 %v2100_v58, %v1233_v54 }
 0x995   :  { %v1255_v4 = vor.u32 1.1754944e-38, %v1254_v0  ;;  %vm1253_vm2 = vcmp.eq.f32.partialorder %v1252_v2, 8.507059e+37  ;;  %v1374_v0 = vld [vmem:[%s3162_s5 + $0x18] sm:$0xff] }
 0x996   :  { %v1235_v56 = vmul.f32 %v1234_v55, %v1212_v42 }
 0x998   :  { %v1237_v30 = vsel %vm1236_vm10, %v1212_v42, %v1235_v56  ;;  %v1378_v56 = vld [vmem:[%s3162_s5 + $0x38] sm:$0xff] }
 0x999   :  { %v2102_v57 = vpop.eup %2101  ;;  %v1240_v59 = vsel %vm1238_vm11, %v1239_v11, %v1237_v30  ;;  %v1377_v11 = vld [vmem:[%s3162_s5 + $0x30] sm:$0xff]  ;;  %1395 = vmatpush.msra.mxu1 %v1378_v56 }
 0x99a   :  { %v1244_v60 = vmul.f32 %v2102_v57, %v1241_v6  ;;  %v1242_v62 = vadd.f32 1e-06, %v1240_v59  ;;  %vm1249_vm14 = vweird.f32 %v2102_v57 }
 0x99b   :  { %vm1250_vm0 = vmor %vm1248_vm15, %vm1249_vm14  ;;  %1396 = vmatpush.msra.mxu1 %v1377_v11 }
 0x99c   :  { %v1245_v63 = vsub.f32 1.0, %v1244_v60  ;;  %2103 = vrcp.f32 %v1242_v62  ;;  %v1269_v17 = vand.u32 2147483648, %v1242_v62  ;;  %v1267_v45 = vand.u32 2147483647, %v1242_v62  ;;  %v1375_v60 = vld [vmem:[%s3162_s5 + $0x20] sm:$0xff] }
 0x99d   :  { %vm1263_vm4 = vweird.f32 %v1242_v62 }
 0x99e   :  { %v1246_v16 = vmul.f32 %v2102_v57, %v1245_v63  ;;  %v1270_v23 = vor.u32 1.1754944e-38, %v1269_v17  ;;  %vm1268_vm6 = vcmp.eq.f32.partialorder %v1267_v45, 8.507059e+37 }
 0x9a0   :  { %v1247_v3 = vadd.f32 %v2102_v57, %v1246_v16 }
 0x9a2   :  { %v2104_v5 = vpop.eup %2103  ;;  %v1251_v8 = vsel %vm1250_vm0, %v2102_v57, %v1247_v3  ;;  %v1376_v57 = vld [vmem:[%s3162_s5 + $0x28] sm:$0xff]  ;;  %v1373_v3 = vld [vmem:[%s3162_s5 + $0x10] sm:$0xff] }
 0x9a3   :  { %v1256_v10 = vsel %vm1253_vm2, %v1255_v4, %v1251_v8  ;;  %v1259_v12 = vmul.f32 %v2104_v5, %v1242_v62  ;;  %vm1264_vm3 = vweird.f32 %v2104_v5  ;;  %1397 = vmatpush.msra.mxu1 %v1376_v57  ;;  %v1485_v57 = vld [vmem:[%s3164_s7 + $0xe0] sm:$0xff] }
 0x9a4   :  { %v1257_v13 = vmul.f32 %v1256_v10, %v1215_v7  ;;  %vm1265_vm5 = vmor %vm1263_vm4, %vm1264_vm3  ;;  %v1372_v7 = vld [vmem:[%s3162_s5 + $0x8] sm:$0xff]  ;;  %v2017_v10 = vld [vmem:[%s3160_s3 + $0xb0] ss:$0 sm:$0xff]  ;;  %1503 = vmatpush.msra.mxu3 %v1485_v57 }
 0x9a5   :  { %v1260_v14 = vsub.f32 1.0, %v1259_v12  ;;  %1398 = vmatpush.msra.mxu1 %v1375_v60  ;;  %v1487_v60 = vld [vmem:[%s3164_s7 + $0xf0] sm:$0xff] }
 0x9a6   :  { %v2590_v15 = vadd.f32 %v2016_v9, %v1257_v13 }
 0x9a7   :  { %v1261_v19 = vmul.f32 %v2104_v5, %v1260_v14  ;;  %1399 = vmatpush.msra.mxu1 %v1374_v0  ;;  %v1483_v0 = vld [vmem:[%s3164_s7 + $0xd0] sm:$0xff] }
 0x9a8   :  { %v1277_v20 = vsel %vm390_vm13, %v2590_v15, 0.0 }
 0x9a9   :  { %1278 = vadd.xlane.f32.xlu1 %v1277_v20  ;;  %v1262_v22 = vadd.f32 %v2104_v5, %v1261_v19  ;;  %1400 = vmatpush.msra.mxu1 %v1373_v3  ;;  %v1473_v3 = vld [vmem:[%s3164_s7 + $0x80] sm:$0xff] }
 0x9ab   :  { %v1266_v46 = vsel %vm1265_vm5, %v2104_v5, %v1262_v22  ;;  %1401 = vmatpush.msra.mxu1 %v1372_v7  ;;  %v2018_v22 = vld [vmem:[%s3160_s3 + $0xb8] ss:$0 sm:$0xff]  ;;  %v1469_v7 = vld [vmem:[%s3164_s7 + $0x60] sm:$0xff] }
 0x9ac   :  { %v1271_v25 = vsel %vm1268_vm6, %v1270_v23, %v1266_v46 }
 0x9ad   :  { %v1272_v26 = vmul.f32 %v1271_v25, %v1216_v24 }
 0x9af   :  { %v2595_v27 = vadd.f32 %v2016_v9, %v1272_v26 }
 0x9b1   :  { %v1280_v28 = vsel %vm390_vm13, %v2595_v27, 0.0 }
 0x9b2   :  { %1281 = vadd.xlane.f32.xlu2 %v1280_v28 }
 0xa1c   :  { %v1279_v29 = vpop.xlane.xlu1 %1278 }
 0xa1d   :  { %v1283_v31 = vmul.f32 %v1279_v29, %v2337_v18 }
 0xa1f   :  { %v2601_v36 = vsub.f32 %v2590_v15, %v1283_v31 }
 0xa21   :  { %v1287_v32 = vmul.f32 %v2601_v36, %v2601_v36  ;;  %v1299_v45 = vmul.f32 %v2017_v10, %v2601_v36 }
 0xa23   :  { %v1289_v33 = vsel %vm390_vm13, %v1287_v32, 0.0 }
 0xa24   :  { %1290 = vadd.xlane.f32.xlu0 %v1289_v33 }
 0xa25   :  { %v1282_v40 = vpop.xlane.xlu2 %1281 }
 0xa26   :  { %v1284_v34 = vmul.f32 %v1282_v40, %v2337_v18 }
 0xa28   :  { %v2608_v41 = vsub.f32 %v2595_v27, %v1284_v34 }
 0xa2a   :  { %v1288_v35 = vmul.f32 %v2608_v41, %v2608_v41  ;;  %v1300_v33 = vmul.f32 %v2017_v10, %v2608_v41  ;;  %v1427_v41 = vld [vmem:[%s3161_s4 + $0xb0] sm:$0xff] }
 0xa2b   :  { %1428 = vmatpush.msrb.mxu2 %v1427_v41  ;;  %v1649_v41 = vld [vmem:[%s3161_s4 + $0x230] sm:$0xff] }
 0xa2c   :  { %v1292_v37 = vsel %vm390_vm13, %v1288_v35, 0.0 }
 0xa2d   :  { %1293 = vadd.xlane.f32.xlu1 %v1292_v37 }
 0xa97   :  { %v1291_v39 = vpop.xlane.xlu0 %1290 }
 0xa98   :  { %v1295_v38 = vmul.f32 0.032258064, %v1291_v39  ;;  %v1371_v39 = vld [vmem:[%s3162_s5] sm:$0xff] }
 0xa99   :  { %1402 = vmatpush.msra.mxu1 %v1371_v39  ;;  %v1634_v39 = vld [vmem:[%s3161_s4 + $0x1b8] sm:$0xff] }
 0xa9a   :  { %2105 = vrsqrt.f32 %v1295_v38  ;;  %vm1308_vm7 = vcmp.eq.f32.partialorder %v1295_v38, inf  ;;  %v1311_v48 = vand.u32 2147483648, %v1295_v38  ;;  %vm1310_vm8 = vcmp.eq.f32.partialorder %v1295_v38, 0.0 }
 0xa9b   :  { %1549 = vmatpush.msrb.mxu1 %v1487_v60  ;;  %v1612_v60 = vld [vmem:[%s3161_s4 + $0x108] sm:$0xff] }
 0xa9d   :  { %1550 = vmatpush.msrb.mxu1 %v1483_v0  ;;  %v1611_v0 = vld [vmem:[%s3161_s4 + $0x100] sm:$0xff] }
 0xaa0   :  { %v2106_v42 = vpop.eup %2105  ;;  %v1294_v21 = vpop.xlane.xlu1 %1293 }
 0xaa1   :  { %v1302_v43 = vmul.f32 %v2106_v42, %v1295_v38  ;;  %v1296_v44 = vmul.f32 0.032258064, %v1294_v21  ;;  %v1426_v21 = vld [vmem:[%s3161_s4 + $0xa8] sm:$0xff] }
 0xaa2   :  { %1429 = vmatpush.msrb.mxu2 %v1426_v21  ;;  %v1632_v21 = vld [vmem:[%s3161_s4 + $0x1a8] sm:$0xff] }
 0xaa3   :  { %v1303_v58 = vmul.f32 %v2106_v42, %v1302_v43  ;;  %2107 = vrsqrt.f32 %v1296_v44  ;;  %vm1320_vm9 = vcmp.eq.f32.partialorder %v1296_v44, inf  ;;  %v1323_v63 = vand.u32 2147483648, %v1296_v44  ;;  %v1425_v43 = vld [vmem:[%s3161_s4 + $0xa0] sm:$0xff] }
 0xaa4   :  { %vm1322_vm10 = vcmp.eq.f32.partialorder %v1296_v44, 0.0  ;;  %1430 = vmatpush.msrb.mxu2 %v1425_v43  ;;  %v1648_v43 = vld [vmem:[%s3161_s4 + $0x228] sm:$0xff] }
 0xaa5   :  { %v1304_v49 = vmul.f32 0.5, %v1303_v58  ;;  %v1422_v58 = vld [vmem:[%s3161_s4 + $0x88] sm:$0xff] }
 0xaa7   :  { %v1305_v18 = vsub.f32 1.5, %v1304_v49  ;;  %v1421_v49 = vld [vmem:[%s3161_s4 + $0x80] sm:$0xff] }
 0xaa9   :  { %v2108_v47 = vpop.eup %2107  ;;  %v1306_v50 = vmul.f32 %v2106_v42, %v1305_v18  ;;  %v1420_v18 = vld [vmem:[%s3161_s4 + $0x78] sm:$0xff] }
 0xaaa   :  { %v1314_v51 = vmul.f32 %v2108_v47, %v1296_v44 }
 0xaab   :  { %v1307_v52 = vmul.f32 %v1306_v50, %v1295_v38  ;;  %v1418_v50 = vld [vmem:[%s3161_s4 + $0x68] sm:$0xff] }
 0xaac   :  { %v1315_v53 = vmul.f32 %v2108_v47, %v1314_v51  ;;  %v1417_v51 = vld [vmem:[%s3161_s4 + $0x60] sm:$0xff] }
 0xaad   :  { %v1309_v61 = vsel %vm1308_vm7, %v1295_v38, %v1307_v52  ;;  %v1416_v52 = vld [vmem:[%s3161_s4 + $0x58] sm:$0xff] }
 0xaae   :  { %v1316_v6 = vmul.f32 0.5, %v1315_v53  ;;  %v1312_v54 = vsel %vm1310_vm8, %v1311_v48, %v1309_v61  ;;  %v1415_v48 = vld [vmem:[%s3161_s4 + $0x50] sm:$0xff] }
 0xaaf   :  { %v1325_v55 = vadd.f32 1e-06, %v1312_v54  ;;  %v1413_v54 = vld [vmem:[%s3161_s4 + $0x40] sm:$0xff] }
 0xab0   :  { %v1317_v30 = vsub.f32 1.5, %v1316_v6  ;;  %v1414_v6 = vld [vmem:[%s3161_s4 + $0x48] sm:$0xff] }
 0xab1   :  { %2109 = vrcp.f32 %v1325_v55  ;;  %v1338_v9 = vand.u32 2147483648, %v1325_v55  ;;  %v1336_v13 = vand.u32 2147483647, %v1325_v55  ;;  %vm1332_vm14 = vweird.f32 %v1325_v55 }
 0xab2   :  { %v1318_v59 = vmul.f32 %v2108_v47, %v1317_v30  ;;  %v1419_v47 = vld [vmem:[%s3161_s4 + $0x70] sm:$0xff] }
 0xab3   :  { %v1339_v17 = vor.u32 1.1754944e-38, %v1338_v9  ;;  %vm1337_vm0 = vcmp.eq.f32.partialorder %v1336_v13, 8.507059e+37  ;;  %v1471_v9 = vld [vmem:[%s3164_s7 + $0x70] sm:$0xff] }
 0xab4   :  { %v1319_v62 = vmul.f32 %v1318_v59, %v1296_v44  ;;  %v1486_v59 = vld [vmem:[%s3164_s7 + $0xe8] sm:$0xff] }
 0xab5   :  { %1526 = vmatpush.msrb.mxu0 %v1486_v59  ;;  %v1642_v59 = vld [vmem:[%s3161_s4 + $0x1f8] sm:$0xff] }
 0xab6   :  { %v1321_v1 = vsel %vm1320_vm9, %v1296_v44, %v1319_v62  ;;  %v1423_v44 = vld [vmem:[%s3161_s4 + $0x90] sm:$0xff]  ;;  %v1481_v62 = vld [vmem:[%s3164_s7 + $0xc0] sm:$0xff] }
 0xab7   :  { %v2110_v16 = vpop.eup %2109  ;;  %v1324_v2 = vsel %vm1322_vm10, %v1323_v63, %v1321_v1  ;;  %v1482_v63 = vld [vmem:[%s3164_s7 + $0xc8] sm:$0xff]  ;;  %v1477_v1 = vld [vmem:[%s3164_s7 + $0xa0] sm:$0xff]  ;;  %1504 = vmatpush.msra.mxu3 %v1481_v62  ;;  %v1641_v62 = vld [vmem:[%s3161_s4 + $0x1f0] sm:$0xff] }
 0xab8   :  { %v1328_v4 = vmul.f32 %v2110_v16, %v1325_v55  ;;  %v1326_v5 = vadd.f32 1e-06, %v1324_v2  ;;  %vm1333_vm11 = vweird.f32 %v2110_v16  ;;  %v1412_v55 = vld [vmem:[%s3161_s4 + $0x38] sm:$0xff]  ;;  %1527 = vmatpush.msrb.mxu0 %v1482_v63  ;;  %v1479_v2 = vld [vmem:[%s3164_s7 + $0xb0] sm:$0xff] }
 0xab9   :  { %vm1334_vm15 = vmor %vm1332_vm14, %vm1333_vm11  ;;  %1505 = vmatpush.msra.mxu3 %v1477_v1  ;;  %1551 = vmatpush.msrb.mxu1 %v1479_v2  ;;  %v1625_v63 = vld [vmem:[%s3161_s4 + $0x170] sm:$0xff]  ;;  %v1640_v1 = vld [vmem:[%s3161_s4 + $0x1e8] sm:$0xff] }
 0xaba   :  { %v1329_v8 = vsub.f32 1.0, %v1328_v4  ;;  %2111 = vrcp.f32 %v1326_v5  ;;  %v1353_v28 = vand.u32 2147483648, %v1326_v5  ;;  %v1351_v31 = vand.u32 2147483647, %v1326_v5  ;;  %v1474_v4 = vld [vmem:[%s3164_s7 + $0x88] sm:$0xff]  ;;  %v1610_v2 = vld [vmem:[%s3161_s4 + $0xf8] sm:$0xff] }
 0xabb   :  { %vm1347_vm3 = vweird.f32 %v1326_v5  ;;  %1506 = vmatpush.msra.mxu3 %v1473_v3  ;;  %v1639_v3 = vld [vmem:[%s3161_s4 + $0x1e0] sm:$0xff] }
 0xabc   :  { %v1330_v12 = vmul.f32 %v2110_v16, %v1329_v8  ;;  %v1354_v36 = vor.u32 1.1754944e-38, %v1353_v28  ;;  %vm1352_vm5 = vcmp.eq.f32.partialorder %v1351_v31, 8.507059e+37  ;;  %v1470_v8 = vld [vmem:[%s3164_s7 + $0x68] sm:$0xff]  ;;  %v1484_v31 = vld [vmem:[%s3164_s7 + $0xd8] sm:$0xff] }
 0xabd   :  { %1507 = vmatpush.msra.mxu3 %v1469_v7  ;;  %v1638_v7 = vld [vmem:[%s3161_s4 + $0x1d8] sm:$0xff] }
 0xabe   :  { %v1331_v14 = vadd.f32 %v2110_v16, %v1330_v12 }
 0xac0   :  { %v2112_v19 = vpop.eup %2111  ;;  %v1335_v20 = vsel %vm1334_vm15, %v2110_v16, %v1331_v14  ;;  %v1478_v16 = vld [vmem:[%s3164_s7 + $0xa8] sm:$0xff]  ;;  %v1465_v14 = vld [vmem:[%s3164_s7 + $0x40] sm:$0xff] }
 0xac1   :  { %v1340_v23 = vsel %vm1337_vm0, %v1339_v17, %v1335_v20  ;;  %v1343_v24 = vmul.f32 %v2112_v19, %v1326_v5  ;;  %vm1348_vm2 = vweird.f32 %v2112_v19  ;;  %1528 = vmatpush.msrb.mxu0 %v1478_v16  ;;  %v1475_v5 = vld [vmem:[%s3164_s7 + $0x90] sm:$0xff]  ;;  %v1466_v17 = vld [vmem:[%s3164_s7 + $0x48] sm:$0xff]  ;;  %1508 = vmatpush.msra.mxu3 %v1465_v14 }
 0xac2   :  { %v1341_v46 = vmul.f32 %v1340_v23, %v1299_v45  ;;  %vm1349_vm4 = vmor %vm1347_vm3, %vm1348_vm2  ;;  %1552 = vmatpush.msrb.mxu1 %v1475_v5  ;;  %v1461_v45 = vld [vmem:[%s3164_s7 + $0x20] sm:$0xff]  ;;  %v1462_v20 = vld [vmem:[%s3164_s7 + $0x28] sm:$0xff] }
 0xac3   :  { %v1344_v25 = vsub.f32 1.0, %v1343_v24  ;;  %1529 = vmatpush.msrb.mxu0 %v1474_v4  ;;  %1509 = vmatpush.msra.mxu3 %v1461_v45  ;;  %v1457_v23 = vld [vmem:[%s3164_s7] sm:$0xff]  ;;  %v1458_v24 = vld [vmem:[%s3164_s7 + $0x8] sm:$0xff]  ;;  %v1609_v5 = vld [vmem:[%s3161_s4 + $0xf0] sm:$0xff] }
 0xac4   :  { %v1359_v26 = vadd.f32 %v2018_v22, %v1341_v46  ;;  %1553 = vmatpush.msrb.mxu1 %v1471_v9  ;;  %v1459_v46 = vld [vmem:[%s3164_s7 + $0x10] sm:$0xff]  ;;  %v1624_v16 = vld [vmem:[%s3161_s4 + $0x168] sm:$0xff]  ;;  %v1623_v4 = vld [vmem:[%s3161_s4 + $0x160] sm:$0xff] }
 0xac5   :  { %v1345_v29 = vmul.f32 %v2112_v19, %v1344_v25  ;;  %1530 = vmatpush.msrb.mxu0 %v1470_v8  ;;  %1510 = vmatpush.msra.mxu3 %v1457_v23  ;;  %v1488_v25 = vld [vmem:[%s3164_s7 + $0xf8] sm:$0xff]  ;;  %v1608_v9 = vld [vmem:[%s3161_s4 + $0xe8] sm:$0xff]  ;;  %v1619_v45 = vld [vmem:[%s3161_s4 + $0x140] sm:$0xff] }
 0xac6   :  { %1363 = vrot.lane.b32.xlu2 %v1359_v26, %s2140_s19  ;;  %v2786_v26 = vld [vmem:[%s3161_s4 + $0xb8] ss:$0 sm:$0xff]  ;;  %v1620_v14 = vld [vmem:[%s3161_s4 + $0x148] sm:$0xff] }
 0xac7   :  { %v1346_v32 = vadd.f32 %v2112_v19, %v1345_v29  ;;  %1531 = vmatpush.msrb.mxu0 %v1466_v17  ;;  %1572 = vmatpush.msrb.mxu3 %v1488_v25  ;;  %v1622_v8 = vld [vmem:[%s3161_s4 + $0x158] sm:$0xff]  ;;  %v1636_v17 = vld [vmem:[%s3161_s4 + $0x1c8] sm:$0xff]  ;;  %v1665_v25 = vld [vmem:[%s3161_s4 + $0x2b0] sm:$0xff] }
 0xac8   :  { %v1604_v23 = vld [vmem:[%s3161_s4 + $0xc8] sm:$0xff] }
 0xac9   :  { %v1350_v40 = vsel %vm1349_vm4, %v2112_v19, %v1346_v32  ;;  %v1467_v19 = vld [vmem:[%s3164_s7 + $0x50] sm:$0xff]  ;;  %1532 = vmatpush.msrb.mxu0 %v1462_v20  ;;  %1573 = vmatpush.msrb.mxu3 %v1484_v31  ;;  %v1635_v20 = vld [vmem:[%s3161_s4 + $0x1c0] sm:$0xff] }
 0xaca   :  { %v1355_v34 = vsel %vm1352_vm5, %v1354_v36, %v1350_v40  ;;  %1554 = vmatpush.msrb.mxu1 %v1467_v19  ;;  %v1480_v36 = vld [vmem:[%s3164_s7 + $0xb8] sm:$0xff]  ;;  %v1661_v31 = vld [vmem:[%s3161_s4 + $0x290] sm:$0xff] }
 0xacb   :  { %v1356_v35 = vmul.f32 %v1355_v34, %v1300_v33  ;;  %1533 = vmatpush.msrb.mxu0 %v1458_v24  ;;  %1574 = vmatpush.msrb.mxu3 %v1480_v36  ;;  %v1476_v33 = vld [vmem:[%s3164_s7 + $0x98] sm:$0xff]  ;;  %v1603_v24 = vld [vmem:[%s3161_s4 + $0xc0] sm:$0xff]  ;;  %v1588_v36 = vld [vmem:[%s3164_s7 + $0x108] sm:$0xff] }
 0xacc   :  { %v1472_v40 = vld [vmem:[%s3164_s7 + $0x78] sm:$0xff] }
 0xacd   :  { %v1360_v37 = vadd.f32 %v2018_v22, %v1356_v35  ;;  %v1463_v22 = vld [vmem:[%s3164_s7 + $0x30] sm:$0xff]  ;;  %1575 = vmatpush.msrb.mxu3 %v1476_v33  ;;  %v1468_v34 = vld [vmem:[%s3164_s7 + $0x58] sm:$0xff] }
 0xace   :  { %1555 = vmatpush.msrb.mxu1 %v1463_v22  ;;  %v1464_v35 = vld [vmem:[%s3164_s7 + $0x38] sm:$0xff]  ;;  %v1605_v22 = vld [vmem:[%s3161_s4 + $0xd0] sm:$0xff] }
 0xacf   :  { %1365 = vrot.lane.b32.xlu0 %v1360_v37, %s2140_s19  ;;  %1576 = vmatpush.msrb.mxu3 %v1472_v40  ;;  %v1460_v37 = vld [vmem:[%s3164_s7 + $0x18] sm:$0xff]  ;;  %v1589_v33 = vld [vmem:[%s3164_s7 + $0x110] sm:$0xff] }
 0xad0   :  { %1556 = vmatpush.msrb.mxu1 %v1459_v46  ;;  %v1606_v19 = vld [vmem:[%s3161_s4 + $0xd8] sm:$0xff] }
 0xad1   :  { %1577 = vmatpush.msrb.mxu3 %v1468_v34  ;;  %v1666_v46 = vld [vmem:[%s3161_s4 + $0x2b8] sm:$0xff] }
 0xad3   :  { %1578 = vmatpush.msrb.mxu3 %v1464_v35 }
 0xad5   :  { %1579 = vmatpush.msrb.mxu3 %v1460_v37  ;;  %v1659_v37 = vld [vmem:[%s3161_s4 + $0x280] sm:$0xff] }
 0xb20   :  { %v1364_v38 = vpop.permute.xlu2 %1363 }
 0xb21   :  { %v2647_v42 = vsel %vm390_vm13, %v2590_v15, %v1364_v38  ;;  %v1424_v15 = vld [vmem:[%s3161_s4 + $0x98] sm:$0xff] }
 0xb22   :  { %1980 = vmatmul.msk.f32.vlgmr.msra.gmra.mxu1 %vm119_vm1, %v2647_v42  ;;  %1431 = vmatpush.msrb.mxu2 %v1424_v15  ;;  %v1650_v38 = vld [vmem:[%s3161_s4 + $0x238] sm:$0xff] }
 0xb23   :  { %1690 = vmatpush.msra.mxu1 %v1634_v39  ;;  %v1618_v15 = vld [vmem:[%s3161_s4 + $0x138] sm:$0xff] }
 0xb24   :  { %1432 = vmatpush.msrb.mxu2 %v1423_v44  ;;  %v1617_v44 = vld [vmem:[%s3161_s4 + $0x130] sm:$0xff]  ;;  %1667 = vmatpush.msra.mxu0 %v1618_v15  ;;  %v1656_v15 = vld [vmem:[%s3161_s4 + $0x268] sm:$0xff] }
 0xb26   :  { %1433 = vmatpush.msrb.mxu2 %v1422_v58  ;;  %v1631_v58 = vld [vmem:[%s3161_s4 + $0x1a0] sm:$0xff]  ;;  %1668 = vmatpush.msra.mxu0 %v1617_v44 }
 0xb27   :  { %v1655_v44 = vld [vmem:[%s3161_s4 + $0x260] sm:$0xff] }
 0xb28   :  { %1434 = vmatpush.msrb.mxu2 %v1421_v49  ;;  %v1647_v49 = vld [vmem:[%s3161_s4 + $0x220] sm:$0xff] }
 0xb2a   :  { %1435 = vmatpush.msrb.mxu2 %v1420_v18  ;;  %v1616_v18 = vld [vmem:[%s3161_s4 + $0x128] sm:$0xff] }
 0xb2b   :  { %1669 = vmatpush.msra.mxu0 %v1616_v18  ;;  %v1652_v18 = vld [vmem:[%s3161_s4 + $0x248] sm:$0xff] }
 0xb2c   :  { %1436 = vmatpush.msrb.mxu2 %v1419_v47  ;;  %v1630_v47 = vld [vmem:[%s3161_s4 + $0x198] sm:$0xff] }
 0xb2e   :  { %1437 = vmatpush.msrb.mxu2 %v1418_v50  ;;  %v1646_v50 = vld [vmem:[%s3161_s4 + $0x218] sm:$0xff] }
 0xb30   :  { %1438 = vmatpush.msrb.mxu2 %v1417_v51  ;;  %v1615_v51 = vld [vmem:[%s3161_s4 + $0x120] sm:$0xff] }
 0xb31   :  { %1670 = vmatpush.msra.mxu0 %v1615_v51  ;;  %v1593_v51 = vld [vmem:[%s3164_s7 + $0x130] sm:$0xff] }
 0xb32   :  { %1439 = vmatpush.msrb.mxu2 %v1416_v52  ;;  %v1629_v52 = vld [vmem:[%s3161_s4 + $0x190] sm:$0xff] }
 0xb34   :  { %1440 = vmatpush.msrb.mxu2 %v1415_v48  ;;  %v1645_v48 = vld [vmem:[%s3161_s4 + $0x210] sm:$0xff] }
 0xb36   :  { %1441 = vmatpush.msrb.mxu2 %v1414_v6  ;;  %v1628_v6 = vld [vmem:[%s3161_s4 + $0x188] sm:$0xff] }
 0xb38   :  { %1442 = vmatpush.msrb.mxu2 %v1413_v54  ;;  %v1644_v54 = vld [vmem:[%s3161_s4 + $0x208] sm:$0xff] }
 0xb3a   :  { %1443 = vmatpush.msrb.mxu2 %v1412_v55 }
 0xb3c   :  { %1713 = vmatpush.msra.mxu2 %v1650_v38  ;;  %v1658_v38 = vld [vmem:[%s3161_s4 + $0x278] sm:$0xff] }
 0xb3e   :  { %1714 = vmatpush.msra.mxu2 %v1649_v41  ;;  %v1657_v41 = vld [vmem:[%s3161_s4 + $0x270] sm:$0xff] }
 0xb40   :  { %1715 = vmatpush.msra.mxu2 %v1648_v43 }
 0xb41   :  { %v1366_v53 = vpop.permute.xlu0 %1365 }
 0xb42   :  { %v2692_v61 = vsel %vm390_vm13, %v2595_v27, %v1366_v53  ;;  %v2019_v27 = vld [vmem:[%s3162_s5 + $0x40] ss:$0 sm:$0xff]  ;;  %1716 = vmatpush.msra.mxu2 %v1647_v49  ;;  %v1614_v53 = vld [vmem:[%s3161_s4 + $0x118] sm:$0xff]  ;;  %v1653_v49 = vld [vmem:[%s3161_s4 + $0x250] sm:$0xff] }
 0xb43   :  { %1981 = vmatmul.msk.f32.gmra.mxu1 %vm119_vm1, %v2692_v61  ;;  %1671 = vmatpush.msra.mxu0 %v1614_v53 }
 0xb44   :  { %1717 = vmatpush.msra.mxu2 %v1646_v50  ;;  %v1592_v50 = vld [vmem:[%s3164_s7 + $0x128] sm:$0xff] }
 0xb46   :  { %1718 = vmatpush.msra.mxu2 %v1645_v48 }
 0xb48   :  { %1719 = vmatpush.msra.mxu2 %v1644_v54  ;;  %v1591_v54 = vld [vmem:[%s3164_s7 + $0x120] sm:$0xff] }
 0xb9f   :  { %v1404_v56 = vpop.f32.mrf.mxu1 }
 0xba0   :  { %v1405_v11 = vadd.f32 %v2019_v27, %v1404_v56 }
 0xba2   :  { %v1410_v30 = vmax.f32 %v1405_v11, 0.0  ;;  %v1627_v11 = vld [vmem:[%s3161_s4 + $0x180] sm:$0xff] }
 0xba4   :  { %1444 = vmatmul.f32.vlgmr.msrb.gmra.mxu2 %v1410_v30  ;;  %v1643_v30 = vld [vmem:[%s3161_s4 + $0x200] sm:$0xff] }
 0xba5   :  { %1720 = vmatpush.msra.mxu2 %v1643_v30 }
 0xba7   :  { %1721 = vmatpush.msra.mxu2 %v1642_v59 }
 0xba9   :  { %1722 = vmatpush.msra.mxu2 %v1641_v62  ;;  %v1798_v62 = vld [vmem:[%s3163_s6 + $0x68] sm:$0xff] }
 0xbab   :  { %1723 = vmatpush.msra.mxu2 %v1640_v1  ;;  %v1796_v1 = vld [vmem:[%s3163_s6 + $0x58] sm:$0xff] }
 0xbad   :  { %1724 = vmatpush.msra.mxu2 %v1639_v3  ;;  %v1792_v3 = vld [vmem:[%s3163_s6 + $0x38] sm:$0xff] }
 0xbaf   :  { %1725 = vmatpush.msra.mxu2 %v1638_v7 }
 0xbc0   :  { %v1407_v10 = vpop.f32.mrf.mxu1 }
 0xbc1   :  { %v1408_v12 = vadd.f32 %v2019_v27, %v1407_v10  ;;  %v1613_v27 = vld [vmem:[%s3161_s4 + $0x110] sm:$0xff] }
 0xbc2   :  { %1672 = vmatpush.msra.mxu0 %v1613_v27  ;;  %v1637_v10 = vld [vmem:[%s3161_s4 + $0x1d0] sm:$0xff] }
 0xbc3   :  { %v1411_v13 = vmax.f32 %v1408_v12, 0.0  ;;  %v1621_v12 = vld [vmem:[%s3161_s4 + $0x150] sm:$0xff]  ;;  %1726 = vmatpush.msra.mxu2 %v1637_v10 }
 0xbc4   :  { %1673 = vmatpush.msra.mxu0 %v1612_v60  ;;  %v1800_v60 = vld [vmem:[%s3163_s6 + $0x78] sm:$0xff] }
 0xbc5   :  { %1447 = vmatmul.f32.gmra.mxu2 %v1411_v13  ;;  %v1607_v13 = vld [vmem:[%s3161_s4 + $0xe0] sm:$0xff] }
 0xbc6   :  { %1674 = vmatpush.msra.mxu0 %v1611_v0  ;;  %1727 = vmatpush.msra.mxu2 %v1636_v17  ;;  %v1797_v0 = vld [vmem:[%s3163_s6 + $0x60] sm:$0xff] }
 0xbc8   :  { %1675 = vmatpush.msra.mxu0 %v1610_v2  ;;  %1728 = vmatpush.msra.mxu2 %v1635_v20  ;;  %v1794_v2 = vld [vmem:[%s3163_s6 + $0x48] sm:$0xff] }
 0xbca   :  { %1676 = vmatpush.msra.mxu0 %v1609_v5  ;;  %1839 = vmatpush.msrb.mxu2 %v1800_v60 }
 0xbcc   :  { %1677 = vmatpush.msra.mxu0 %v1608_v9  ;;  %1840 = vmatpush.msrb.mxu2 %v1798_v62 }
 0xbce   :  { %1678 = vmatpush.msra.mxu0 %v1607_v13  ;;  %1841 = vmatpush.msrb.mxu2 %v1796_v1 }
 0xbd0   :  { %1679 = vmatpush.msra.mxu0 %v1606_v19  ;;  %1842 = vmatpush.msrb.mxu2 %v1794_v2 }
 0xbd2   :  { %1680 = vmatpush.msra.mxu0 %v1605_v22  ;;  %1843 = vmatpush.msrb.mxu2 %v1792_v3 }
 0xbd4   :  { %1681 = vmatpush.msra.mxu0 %v1604_v23 }
 0xbd6   :  { %1682 = vmatpush.msra.mxu0 %v1603_v24  ;;  %v1759_v24 = vld [vmem:[%s3159_s2 + $0x20] sm:$0x3] }
 0xc27   :  { %v1445_v28 = vpop.f32.mrf.mxu2 }
 0xc28   :  { %v1451_v29 = vadd.f32 %v1445_v28, %v2647_v42  ;;  %v1633_v42 = vld [vmem:[%s3161_s4 + $0x1b0] sm:$0xff]  ;;  %v1663_v28 = vld [vmem:[%s3161_s4 + $0x2a0] sm:$0xff] }
 0xc29   :  { %1691 = vmatpush.msra.mxu1 %v1633_v42  ;;  %v1587_v42 = vld [vmem:[%s3164_s7 + $0x100] sm:$0xff] }
 0xc2a   :  { %v2793_v32 = vadd.f32 %v2786_v26, %v1451_v29  ;;  %v1662_v29 = vld [vmem:[%s3161_s4 + $0x298] sm:$0xff] }
 0xc2b   :  { %1692 = vmatpush.msra.mxu1 %v1632_v21 }
 0xc2c   :  { %1982 = vmatmul.msk.f32.vlgmr.msra.gmra.mxu3 %vm119_vm1, %v2793_v32  ;;  %1984 = vmatmul.msk.f32.vlgmr.msrb.gmra.mxu0 %vm119_vm1, %v2793_v32 }
 0xc2d   :  { %1986 = vmatmul.msk.f32.vlgmr.msrb.gmra.mxu1 %vm119_vm1, %v2793_v32  ;;  %1736 = vmatpush.msra.mxu3 %v1666_v46  ;;  %v1793_v46 = vld [vmem:[%s3163_s6 + $0x40] sm:$0xff] }
 0xc2e   :  { %1693 = vmatpush.msra.mxu1 %v1631_v58  ;;  %v1654_v58 = vld [vmem:[%s3161_s4 + $0x258] sm:$0xff] }
 0xc2f   :  { %1737 = vmatpush.msra.mxu3 %v1665_v25  ;;  %v1791_v25 = vld [vmem:[%s3163_s6 + $0x30] sm:$0xff] }
 0xc30   :  { %1694 = vmatpush.msra.mxu1 %v1630_v47  ;;  %v1651_v47 = vld [vmem:[%s3161_s4 + $0x240] sm:$0xff] }
 0xc32   :  { %1695 = vmatpush.msra.mxu1 %v1629_v52 }
 0xc34   :  { %1696 = vmatpush.msra.mxu1 %v1628_v6 }
 0xc36   :  { %1697 = vmatpush.msra.mxu1 %v1627_v11 }
 0xc48   :  { %v1448_v55 = vpop.f32.mrf.mxu2 }
 0xc49   :  { %v1452_v56 = vadd.f32 %v1448_v55, %v2692_v61  ;;  %v1626_v61 = vld [vmem:[%s3161_s4 + $0x178] sm:$0xff] }
 0xc4a   :  { %1698 = vmatpush.msra.mxu1 %v1626_v61 }
 0xc4b   :  { %v1456_v57 = vadd.f32 %v2786_v26, %v1452_v56  ;;  %v1664_v26 = vld [vmem:[%s3161_s4 + $0x2a8] sm:$0xff]  ;;  %v1590_v56 = vld [vmem:[%s3164_s7 + $0x118] sm:$0xff] }
 0xc4c   :  { %1699 = vmatpush.msra.mxu1 %v1625_v63  ;;  %1738 = vmatpush.msra.mxu3 %v1664_v26  ;;  %v1799_v63 = vld [vmem:[%s3163_s6 + $0x70] sm:$0xff]  ;;  %v1789_v26 = vld [vmem:[%s3163_s6 + $0x20] sm:$0xff] }
 0xc4d   :  { %1983 = vmatmul.msk.f32.gmra.mxu3 %vm119_vm1, %v1456_v57  ;;  %1985 = vmatmul.msk.f32.gmra.mxu0 %vm119_vm1, %v1456_v57 }
 0xc4e   :  { %1987 = vmatmul.msk.f32.gmra.mxu1 %vm119_vm1, %v1456_v57  ;;  %1739 = vmatpush.msra.mxu3 %v1663_v28  ;;  %v1788_v28 = vld [vmem:[%s3163_s6 + $0x18] sm:$0xff] }
 0xc4f   :  { %1700 = vmatpush.msra.mxu1 %v1624_v16  ;;  %v1795_v16 = vld [vmem:[%s3163_s6 + $0x50] sm:$0xff] }
 0xc50   :  { %1740 = vmatpush.msra.mxu3 %v1662_v29  ;;  %v1787_v29 = vld [vmem:[%s3163_s6 + $0x10] sm:$0xff] }
 0xc51   :  { %1701 = vmatpush.msra.mxu1 %v1623_v4  ;;  %v1790_v4 = vld [vmem:[%s3163_s6 + $0x28] sm:$0xff] }
 0xc52   :  { %1741 = vmatpush.msra.mxu3 %v1661_v31  ;;  %1844 = vmatpush.msrb.mxu2 %v1790_v4  ;;  %v1786_v31 = vld [vmem:[%s3163_s6 + $0x8] sm:$0xff] }
 0xc53   :  { %1702 = vmatpush.msra.mxu1 %v1622_v8 }
 0xc54   :  { %1845 = vmatpush.msrb.mxu2 %v1788_v28 }
 0xc55   :  { %1988 = vmatmul.msk.f32.vlgmr.msrb.gmra.mxu3 %vm119_vm1, %v2793_v32  ;;  %1703 = vmatpush.msra.mxu1 %v1621_v12  ;;  %v1660_v32 = vld [vmem:[%s3161_s4 + $0x288] sm:$0xff] }
 0xc56   :  { %1742 = vmatpush.msra.mxu3 %v1660_v32  ;;  %v1785_v32 = vld [vmem:[%s3163_s6] sm:$0xff]  ;;  %1846 = vmatpush.msrb.mxu2 %v1786_v31 }
 0xc57   :  { %1704 = vmatpush.msra.mxu1 %v1620_v14 }
 0xc58   :  { %1743 = vmatpush.msra.mxu3 %v1659_v37  ;;  %v1862_v37 = vld [vmem:[%s3162_s5 + $0x98] sm:$0xff] }
 0xc59   :  { %1705 = vmatpush.msra.mxu1 %v1619_v45 }
 0xc5a   :  { %1744 = vmatpush.msra.mxu3 %v1658_v38  ;;  %v1860_v38 = vld [vmem:[%s3162_s5 + $0x88] sm:$0xff] }
 0xc5b   :  { %1819 = vmatpush.msrb.mxu1 %v1799_v63 }
 0xc5c   :  { %1745 = vmatpush.msra.mxu3 %v1657_v41  ;;  %v1858_v41 = vld [vmem:[%s3162_s5 + $0x78] sm:$0xff] }
 0xc5d   :  { %1989 = vmatmul.msk.f32.gmra.mxu3 %vm119_vm1, %v1456_v57  ;;  %v1594_v57 = vld [vmem:[%s3164_s7 + $0x138] sm:$0xff]  ;;  %1820 = vmatpush.msrb.mxu1 %v1797_v0 }
 0xc5e   :  { %1746 = vmatpush.msra.mxu3 %v1656_v15  ;;  %v1855_v15 = vld [vmem:[%s3162_s5 + $0x60] sm:$0xff] }
 0xc5f   :  { %1821 = vmatpush.msrb.mxu1 %v1795_v16 }
 0xc60   :  { %1747 = vmatpush.msra.mxu3 %v1655_v44  ;;  %v2021_v44 = vld [vmem:[%s3161_s4 + $0x2c0] ss:$0 sm:$0xff] }
 0xc61   :  { %1822 = vmatpush.msrb.mxu1 %v1793_v46 }
 0xc62   :  { %1748 = vmatpush.msra.mxu3 %v1654_v58 }
 0xc63   :  { %1823 = vmatpush.msrb.mxu1 %v1791_v25 }
 0xc64   :  { %1749 = vmatpush.msra.mxu3 %v1653_v49 }
 0xc65   :  { %1824 = vmatpush.msrb.mxu1 %v1789_v26 }
 0xc66   :  { %1750 = vmatpush.msra.mxu3 %v1652_v18  ;;  %v1854_v18 = vld [vmem:[%s3162_s5 + $0x58] sm:$0xff] }
 0xc67   :  { %1825 = vmatpush.msrb.mxu1 %v1787_v29 }
 0xc68   :  { %1751 = vmatpush.msra.mxu3 %v1651_v47  ;;  %v1853_v47 = vld [vmem:[%s3162_s5 + $0x50] sm:$0xff] }
 0xc69   :  { %1826 = vmatpush.msrb.mxu1 %v1785_v32 }
 0xca9   :  { %v1535_v40 = vpop.f32.mrf.mxu0 }
 0xcaa   :  { %v1596_v34 = vmul.f32 %v1588_v36, %v1535_v40  ;;  %v1558_v35 = vpop.f32.mrf.mxu1  ;;  %v1867_v36 = vld [vmem:[%s3162_s5 + $0xc0] sm:$0xff]  ;;  %v1865_v40 = vld [vmem:[%s3162_s5 + $0xb0] sm:$0xff] }
 0xcab   :  { %v1597_v39 = vmul.f32 %v1589_v33, %v1558_v35  ;;  %v1866_v33 = vld [vmem:[%s3162_s5 + $0xb8] sm:$0xff]  ;;  %1870 = vmatpush.msrb.mxu3 %v1867_v36  ;;  %v1863_v35 = vld [vmem:[%s3162_s5 + $0xa0] sm:$0xff] }
 0xcac   :  { %1706 = vmatmul.f32.vlgmr.msra.gmra.mxu1 %v1596_v34  ;;  %v1864_v34 = vld [vmem:[%s3162_s5 + $0xa8] sm:$0xff] }
 0xcad   :  { %1729 = vmatmul.f32.vlgmr.msra.gmra.mxu2 %v1597_v39  ;;  %1871 = vmatpush.msrb.mxu3 %v1866_v33  ;;  %v1861_v39 = vld [vmem:[%s3162_s5 + $0x90] sm:$0xff] }
 0xcaf   :  { %v1512_v21 = vpop.f32.mrf.mxu3  ;;  %1872 = vmatpush.msrb.mxu3 %v1865_v40 }
 0xcb0   :  { %v1595_v43 = vmul.f32 %v1587_v42, %v1512_v21  ;;  %v1859_v42 = vld [vmem:[%s3162_s5 + $0x80] sm:$0xff]  ;;  %v1857_v21 = vld [vmem:[%s3162_s5 + $0x70] sm:$0xff] }
 0xcb1   :  { %1873 = vmatpush.msrb.mxu3 %v1864_v34 }
 0xcb2   :  { %1683 = vmatmul.f32.vlgmr.msra.gmra.mxu0 %v1595_v43  ;;  %v1856_v43 = vld [vmem:[%s3162_s5 + $0x68] sm:$0xff] }
 0xcb3   :  { %1874 = vmatpush.msrb.mxu3 %v1863_v35 }
 0xcb5   :  { %1875 = vmatpush.msrb.mxu3 %v1862_v37 }
 0xcb7   :  { %1876 = vmatpush.msrb.mxu3 %v1861_v39 }
 0xcb9   :  { %1877 = vmatpush.msrb.mxu3 %v1860_v38 }
 0xcbb   :  { %1878 = vmatpush.msrb.mxu3 %v1859_v42 }
 0xcbd   :  { %1879 = vmatpush.msrb.mxu3 %v1858_v41 }
 0xcbf   :  { %1880 = vmatpush.msrb.mxu3 %v1857_v21 }
 0xcc1   :  { %1881 = vmatpush.msrb.mxu3 %v1856_v43 }
 0xcc3   :  { %1882 = vmatpush.msrb.mxu3 %v1855_v15 }
 0xcc5   :  { %1883 = vmatpush.msrb.mxu3 %v1854_v18 }
 0xcc7   :  { %1884 = vmatpush.msrb.mxu3 %v1853_v47 }
 0xcca   :  { %v1538_v52 = vpop.f32.mrf.mxu0 }
 0xccb   :  { %v1600_v48 = vmul.f32 %v1592_v50, %v1538_v52  ;;  %v1561_v53 = vpop.f32.mrf.mxu1  ;;  %v1852_v50 = vld [vmem:[%s3162_s5 + $0x48] sm:$0xff] }
 0xccc   :  { %v1601_v6 = vmul.f32 %v1593_v51, %v1561_v53  ;;  %1885 = vmatpush.msrb.mxu3 %v1852_v50  ;;  %v1991_v51 = vld [vmem:[%s3163_s6 + $0x80] ss:$8 sm:$0x3] }
 0xccd   :  { %1709 = vmatmul.f32.gmra.mxu1 %v1600_v48  ;;  %v1804_v52 = vperm.slane %v1991_v51, 0  ;;  %v1805_v48 = vperm.slane %v1991_v51, 1 }
 0xcce   :  { %1732 = vmatmul.f32.gmra.mxu2 %v1601_v6 }
 0xcd0   :  { %v1515_v55 = vpop.f32.mrf.mxu3 }
 0xcd1   :  { %v1599_v27 = vmul.f32 %v1591_v54, %v1515_v55 }
 0xcd3   :  { %1686 = vmatmul.f32.gmra.mxu0 %v1599_v27 }
 0xcd8   :  { %v1581_v11 = vpop.f32.mrf.mxu3 }
 0xcd9   :  { %v1598_v30 = vmul.f32 %v1590_v56, %v1581_v11  ;;  %v2022_v56 = vld [vmem:[%s3162_s5 + $0xc8] ss:$0 sm:$0xff] }
 0xcdb   :  { %1752 = vmatmul.f32.vlgmr.msra.gmra.mxu3 %v1598_v30 }
 0xce0   :  { %v1584_v59 = vpop.f32.mrf.mxu3 }
 0xce1   :  { %v1602_v61 = vmul.f32 %v1594_v57, %v1584_v59 }
 0xce3   :  { %1755 = vmatmul.f32.gmra.mxu3 %v1602_v61 }
 0xd29   :  { %v1707_v7 = vpop.f32.mrf.mxu1 }
 0xd2f   :  { %v1684_v5 = vpop.f32.mrf.mxu0 }
 0xd30   :  { %v1730_v8 = vpop.f32.mrf.mxu2  ;;  %v1708_v14 = vadd.f32 %v1707_v7, %v1684_v5 }
 0xd32   :  { %v1731_v20 = vadd.f32 %v1730_v8, %v1708_v14 }
 0xd4a   :  { %v1710_v12 = vpop.f32.mrf.mxu1 }
 0xd50   :  { %v1687_v9 = vpop.f32.mrf.mxu0 }
 0xd51   :  { %v1711_v13 = vadd.f32 %v1710_v12, %v1687_v9  ;;  %v1733_v17 = vpop.f32.mrf.mxu2 }
 0xd53   :  { %v1734_v19 = vadd.f32 %v1733_v17, %v1711_v13 }
 0xd5e   :  { %v1753_v10 = vpop.f32.mrf.mxu3 }
 0xd5f   :  { %v1754_v23 = vadd.f32 %v1753_v10, %v1731_v20 }
 0xd66   :  { %v1756_v45 = vpop.f32.mrf.mxu3 }
 0xd67   :  { %v1757_v22 = vadd.f32 %v1756_v45, %v1734_v19 }
 0xd69   :  { %1779 = vmatpush.msrb.mxu0 %v1757_v22 }
 0xd6b   :  { %1780 = vmatpush.msrb.mxu0 %v1754_v23 }
 0xd6c   :  { %1990 = vmatmul.msk.f32.vlgmr.msrb.gmra.mxu0 %vm322_vm12, %v1759_v24 }
 0xde9   :  { %v1782_v58 = vpop.f32.mrf.mxu0 }
 0xdea   :  { %v1783_v49 = vadd.f32 %v2021_v44, %v1782_v58 }
 0xdec   :  { %1993 = vmatmul.msk.f32.vlgmr.msrb.gmra.mxu2 %vm119_vm1, %v1783_v49  ;;  %1992 = vmatmul.msk.f32.vlgmr.msrb.gmra.mxu1 %vm119_vm1, %v1783_v49 }
 0xe69   :  { %v1828_v53 = vpop.f32.mrf.mxu1 }
 0xe6a   :  { %v1829_v54 = vadd.f32 %v1828_v53, %v1804_v52 }
 0xe6f   :  { %v1848_v6 = vpop.f32.mrf.mxu2 }
 0xe70   :  { %v1849_v55 = vadd.f32 %v1848_v6, %v1805_v48 }
 0xe72   :  { %v1851_v27 = vmul.f32 %v1849_v55, %v1829_v54 }
 0xe74   :  { %1886 = vmatmul.f32.vlgmr.msrb.gmra.mxu3 %v1851_v27 }
 0xef7   :  { %v1887_v11 = vpop.f32.mrf.mxu3 }
 0xef8   :  { %v1888_v30 = vadd.f32 %v2022_v56, %v1887_v11 }
 0xefa   :  { %1890 = vst [vmem:[#allocation2] sm:$0x3] %v1888_v30 }
 0xefb   :  { %1901 = dma.vmem_to_hbm [thread:$0]  %s1897_s9, 32, %s1899_s12, [#allocation3]  }
 0xefc   :  { %2137 = dma.done.wait [#allocation3], 32  }
 0xefd   :  { %2138 = vsyncadd [#allocation3], 4294967264 }
 0xefe   :  { %1906 = vsyncpa [#allocation3], 1 }

</bundles_post_ra>
